<compile_context>
chip_gen: v6e
topology: v6e:2x2x1
jax: 0.10.0
libtpu: 0.0.40
codegen_flags: <defaults>
</compile_context>

<pallas_src>
import functools

import jax
import jax.numpy as jnp
import numpy as np
from jax import lax
from jax.experimental import pallas as pl
from jax.experimental.pallas import tpu as pltpu

POOLS = (5, 5, 4)
VMEM_LIMIT_BYTES = 32 * 1024 * 1024   # fits under v7x's 64 MiB physical and v5e/v6e defaults


def _cdiv(a, b):
    return (a + b - 1) // b


# ----------------------------------------------------------------------------
# Kernel 1: fused 1x1-conv + width-maxpool stack (pure 2D: rows x channels)
# ----------------------------------------------------------------------------
def _conv_stack_kernel(x_ref,
                       w1a, b1a, w1b, b1b,
                       w2a, b2a, w2b, b2b,
                       w3a, b3a, w3b, b3b,
                       out_ref, *, pools):
    k1, k2, k3 = pools

    def mm_relu(h, w_ref, b_ref):
        # Single tall 2D matmul: bf16 single-pass MXU, f32 accumulation, fused bias + ReLU.
        y = jnp.dot(h.astype(jnp.bfloat16), w_ref[...],
                    preferred_element_type=jnp.float32)
        return jnp.maximum(y + b_ref[...], 0.0)

    def pool_rows(h, k):
        # Rows are ordered pool-window-major, so the width max-pool is an elementwise max of
        # k contiguous, sublane-aligned row chunks (VPU only, one dense result; no XLU, no
        # per-window stores).
        rows = h.shape[0] // k
        out = h[0:rows, :]
        for i in range(1, k):
            out = jnp.maximum(out, h[i * rows:(i + 1) * rows, :])
        return out

    h = x_ref[...]                       # (k1*k2*k3*gp, Cin) f32
    h = mm_relu(h, w1a, b1a)             # Cin -> 32   (K=3: MXU underfilled but not the bottleneck)
    h = mm_relu(h, w1b, b1b)             # 32 -> 32
    h = pool_rows(h, k1)                 # pool over j1
    h = mm_relu(h, w2a, b2a)             # 32 -> 64
    h = mm_relu(h, w2b, b2b)             # 64 -> 64
    h = pool_rows(h, k2)                 # pool over j2
    h = mm_relu(h, w3a, b3a)             # 64 -> 128
    h = mm_relu(h, w3b, b3b)             # 128 -> 128
    out_ref[...] = pool_rows(h, k3).astype(out_ref.dtype)   # (gp, 128) lane-dense store


def _pick_gp(G, pools, budget_bytes=12 * 1024 * 1024):
    """Rows-of-output per grid step: multiple of 8, VMEM-budgeted, >=2 grid steps when possible."""
    k1, k2, k3 = pools
    kj = k1 * k2 * k3
    # Live f32 bytes per output row (lane-padded to 128): 2x double-buffered input block,
    # ~2 live stage-1 intermediates, stage-2/3 intermediates, 2x double-buffered output block.
    per_g = 4 * 128 * (2 * kj + 2 * kj + 3 * (kj // k1) + 3 * (kj // (k1 * k2)) + 2)
    cap = max(8, (budget_bytes // per_g) // 8 * 8)
    if G >= 16:   # guarantee >=2 grid steps so v7x's two TensorCores both get work
        cap = min(cap, max(8, (G // 2) // 8 * 8))
    return min(cap, max(8, _cdiv(G, 8) * 8))


def conv_pool_stack(x, prep, *, pools=POOLS):
    """x: (B, H, W, C) f32 channels-last.  Returns (B, H, W3, 128) features, (h, w3, c) row order."""
    B, H, W, C = x.shape
    k1, k2, k3 = pools
    kj = k1 * k2 * k3
    assert W % kj == 0, "width must be divisible by 5*5*4 (as the module's flatten assumes)"
    W3 = W // kj
    G = B * H * W3

    # Layout plumbing (wrapper-side): w = ((w3*k3 + j3)*k2 + j2)*k1 + j1.
    # Reorder rows to (j1, j2, j3, g) with g=(b,h,w3) so each pool is a contiguous-chunk max.
    xr = x.reshape(B, H, W3, k3, k2, k1, C)
    xr = jnp.transpose(xr, (5, 4, 3, 0, 1, 2, 6)).reshape(kj, G, C)

    gp = _pick_gp(G, pools)
    ng = _cdiv(G, gp)
    gpad = ng * gp
    if gpad != G:
        xr = jnp.pad(xr, ((0, 0), (0, gpad - G), (0, 0)))   # padded g-rows are independent garbage
    # Make each g-tile's rows contiguous: (g_tile, jcombined, g_local, C) flattened to 2D.
    xr = xr.reshape(kj, ng, gp, C).transpose(1, 0, 2, 3).reshape(ng * kj * gp, C)

    c3 = prep["c3b_w"].shape[1]
    weight_args, weight_specs = [], []
    for name in ("c1a", "c1b", "c2a", "c2b", "c3a", "c3b"):
        w = prep[name + "_w"]
        b = prep[name + "_b"]
        weight_args += [w, b]
        weight_specs += [pl.BlockSpec(w.shape, lambda i: (0, 0)),   # constant block -> fetched once
                         pl.BlockSpec(b.shape, lambda i: (0, 0))]

    out = pl.pallas_call(
        functools.partial(_conv_stack_kernel, pools=pools),
        out_shape=jax.ShapeDtypeStruct((gpad, c3), jnp.float32),
        grid=(ng,),
        in_specs=[pl.BlockSpec((kj * gp, C), lambda i: (i, 0))] + weight_specs,
        out_specs=pl.BlockSpec((gp, c3), lambda i: (i, 0)),
        compiler_params=pltpu.CompilerParams(
            dimension_semantics=("parallel",),
            vmem_limit_bytes=VMEM_LIMIT_BYTES),
    )(xr, *weight_args)

    return out[:G].reshape(B, H, W3, c3)


# ----------------------------------------------------------------------------
# Kernel 2: fused fc1(+ReLU) -> fc2 -> dropout(eval) -> fc3
# ----------------------------------------------------------------------------
def _fc_stack_kernel(x_ref, w1_ref, b1_ref, w2_ref, b2_ref, w3_ref, b3_ref,
                     o_ref, acc_ref):
    k = pl.program_id(0)

    @pl.when(k == 0)
    def _init():
        acc_ref[...] = jnp.zeros_like(acc_ref)

    # Stream fc1's K dimension across the grid into an f32 VMEM accumulator.
    acc_ref[...] += jnp.dot(x_ref[...].astype(jnp.bfloat16), w1_ref[...],
                            preferred_element_type=jnp.float32)

    @pl.when(k == pl.num_programs(0) - 1)
    def _finalize():
        h = jnp.maximum(acc_ref[...] + b1_ref[...], 0.0)                    # fc1 + ReLU
        h = jnp.dot(h.astype(jnp.bfloat16), w2_ref[...],
                    preferred_element_type=jnp.float32) + b2_ref[...]        # fc2
        # TODO(synk): nn.Dropout(0.1) is identity in eval/inference mode; training-mode mask omitted.
        h = jnp.dot(h.astype(jnp.bfloat16), w3_ref[...],
                    preferred_element_type=jnp.float32) + b3_ref[...]        # fc3
        o_ref[...] = h.astype(o_ref.dtype)


def fc_stack(flat, prep):
    M, Kf = flat.shape
    w1, b1 = prep["fc1_w"], prep["fc1_b"]
    w2, b2 = prep["fc2_w"], prep["fc2_b"]
    w3, b3 = prep["fc3_w"], prep["fc3_b"]
    N1 = w1.shape[1]
    O = w3.shape[1]

    # fc1 K tile: largest multiple-of-128 divisor of Kf up to 2048 (Kf is always a multiple of 128).
    if Kf <= 2048:
        tk = Kf
    else:
        tk = max(t for t in range(128, 2049, 128) if Kf % t == 0)

    return pl.pallas_call(
        _fc_stack_kernel,
        out_shape=jax.ShapeDtypeStruct((M, O), jnp.float32),
        grid=(Kf // tk,),
        in_specs=[
            pl.BlockSpec((M, tk), lambda k: (0, k)),        # activations: stream fc1's K
            pl.BlockSpec((tk, N1), lambda k: (k, 0)),       # fc1 weight K tiles
            pl.BlockSpec(b1.shape, lambda k: (0, 0)),
            pl.BlockSpec(w2.shape, lambda k: (0, 0)),       # resident, fetched once
            pl.BlockSpec(b2.shape, lambda k: (0, 0)),
            pl.BlockSpec(w3.shape, lambda k: (0, 0)),       # resident, fetched once
            pl.BlockSpec(b3.shape, lambda k: (0, 0)),
        ],
        out_specs=pl.BlockSpec((M, O), lambda k: (0, 0)),
        scratch_shapes=[pltpu.VMEM((M, N1), jnp.float32)],
        compiler_params=pltpu.CompilerParams(
            dimension_semantics=("arbitrary",),              # K is a reduction axis
            vmem_limit_bytes=VMEM_LIMIT_BYTES),
    )(flat, w1, b1, w2, b2, w3, b3)


# ----------------------------------------------------------------------------
# Parameter prep + full forward
# ----------------------------------------------------------------------------
def prepare_params(params, input_shape, *, pools=POOLS):
    """One-time parameter prep: bf16 matmul weights, (1,N) f32 biases, NCHW-flatten folded into fc1."""
    H, W, _ = input_shape
    W3 = W // (pools[0] * pools[1] * pools[2])
    prep = {}
    for n in ("c1a", "c1b", "c2a", "c2b", "c3a", "c3b", "fc2", "fc3"):
        prep[n + "_w"] = params[n + "_w"].astype(jnp.bfloat16)
        prep[n + "_b"] = params[n + "_b"].reshape(1, -1).astype(jnp.float32)
    # Fold PyTorch's NCHW flatten order (rows indexed c*H*W3 + h*W3 + w3) into fc1's rows so the
    # kernel-1 output (rows indexed (h*W3+w3)*128 + c) feeds fc1 with no transpose in between.
    c3 = params["c3b_w"].shape[1]
    w1 = params["fc1_w"].reshape(c3, H, W3, -1).transpose(1, 2, 0, 3).reshape(H * W3 * c3, -1)
    prep["fc1_w"] = w1.astype(jnp.bfloat16)
    prep["fc1_b"] = params["fc1_b"].reshape(1, -1).astype(jnp.float32)
    return prep


def plnet_noatt_forward(x, prep, output_shape):
    """x: (B, H, W, C) channels-last (the module's expected input layout); prep from prepare_params."""
    B = x.shape[0]
    feats = conv_pool_stack(x, prep)                 # (B, H, W3, 128)
    flat = feats.reshape(B, -1)                      # (h, w3, c) row order -- matches folded fc1_w
    out = fc_stack(flat, prep)                       # (B, out0*out1)
    return out.reshape(B, output_shape[0], output_shape[1])


# ----------------------------------------------------------------------------
# Parameters (xavier_normal weights, zero biases -- same init scheme as the module)
# ----------------------------------------------------------------------------
def init_params(key, input_shape, output_shape):
    H, W, C = input_shape
    W3 = W // (5 * 5 * 4)
    flat = 128 * H * W3
    dims = [
        ("c1a", C, 32), ("c1b", 32, 32),
        ("c2a", 32, 64), ("c2b", 64, 64),
        ("c3a", 64, 128), ("c3b", 128, 128),
        ("fc1", flat, 1024), ("fc2", 1024, 1024),
        ("fc3", 1024, output_shape[0] * output_shape[1]),
    ]
    params = {}
    for k_, (name, fin, fout) in zip(jax.random.split(key, len(dims)), dims):
        std = (2.0 / (fin + fout)) ** 0.5            # xavier_normal_
        params[name + "_w"] = std * jax.random.normal(k_, (fin, fout), jnp.float32)
        params[name + "_b"] = jnp.zeros((fout,), jnp.float32)
    return params


# ----------------------------------------------------------------------------
# Pure-JAX reference (mirrors the PyTorch forward, f32 HIGHEST precision)
# ----------------------------------------------------------------------------
def reference_forward(x, p, output_shape):
    hp = lax.Precision.HIGHEST

    def pconv(h, w, b):
        return jax.nn.relu(jnp.einsum("bhwc,co->bhwo", h, w, precision=hp) + b)

    def pool_w(h, k):
        B, H, W, C = h.shape
        return h.reshape(B, H, W // k, k, C).max(axis=3)

    h = pconv(pconv(x, p["c1a_w"], p["c1a_b"]), p["c1b_w"], p["c1b_b"])
    h = pool_w(h, 5)
    h = pconv(pconv(h, p["c2a_w"], p["c2a_b"]), p["c2b_w"], p["c2b_b"])
    h = pool_w(h, 5)
    h = pconv(pconv(h, p["c3a_w"], p["c3a_b"]), p["c3b_w"], p["c3b_b"])
    h = pool_w(h, 4)
    B = x.shape[0]
    f = jnp.transpose(h, (0, 3, 1, 2)).reshape(B, -1)           # NCHW flatten order
    f = jax.nn.relu(jnp.dot(f, p["fc1_w"], precision=hp) + p["fc1_b"])
    f = jnp.dot(f, p["fc2_w"], precision=hp) + p["fc2_b"]
    f = jnp.dot(f, p["fc3_w"], precision=hp) + p["fc3_b"]
    return f.reshape(B, output_shape[0], output_shape[1])


if __name__ == "__main__":
    B = 2
    input_shape = (4, 100, 3)        # (H, W, C): W divisible by 5*5*4 as the module requires
    output_shape = (4, 8)

    key = jax.random.PRNGKey(0)
    kx, kp = jax.random.split(key)
    x = jax.random.normal(kx, (B,) + input_shape, dtype=jnp.float32)
    params = init_params(kp, input_shape, output_shape)
    prep = prepare_params(params, input_shape)

    out = plnet_noatt_forward(x, prep, output_shape)
    jax.block_until_ready(out)

    ref = reference_forward(x, params, output_shape)
    assert out.shape == (B, output_shape[0], output_shape[1])
    # Kernels use the single-pass bf16 MXU path (f32 accumulation); reference is f32 HIGHEST,
    # so tolerances are loosened to cover the expected bf16 drift (still catches wiring bugs).
    np.testing.assert_allclose(np.asarray(out), np.asarray(ref), rtol=5e-2, atol=5e-2)

    print("KERNEL_OK")
</pallas_src>

<mosaic_0001>
module attributes {stable_mosaic.version = 11 : i64} {
  func.func @_conv_stack_kernel(%arg0: i32, %arg1: memref<800x3xf32, #tpu.memory_space<vmem>>, %arg2: memref<3x32xbf16, #tpu.memory_space<vmem>>, %arg3: memref<1x32xf32, #tpu.memory_space<vmem>>, %arg4: memref<32x32xbf16, #tpu.memory_space<vmem>>, %arg5: memref<1x32xf32, #tpu.memory_space<vmem>>, %arg6: memref<32x64xbf16, #tpu.memory_space<vmem>>, %arg7: memref<1x64xf32, #tpu.memory_space<vmem>>, %arg8: memref<64x64xbf16, #tpu.memory_space<vmem>>, %arg9: memref<1x64xf32, #tpu.memory_space<vmem>>, %arg10: memref<64x128xbf16, #tpu.memory_space<vmem>>, %arg11: memref<1x128xf32, #tpu.memory_space<vmem>>, %arg12: memref<128x128xbf16, #tpu.memory_space<vmem>>, %arg13: memref<1x128xf32, #tpu.memory_space<vmem>>, %arg14: memref<8x128xf32, #tpu.memory_space<vmem>>) attributes {dimension_semantics = [#tpu.dimension_semantics<parallel>], iteration_bounds = array<i64: 1>, scalar_prefetch = 0 : i64, scratch_operands = 0 : i64, tpu.core_type = #tpu.core_type<tc>, window_params = [{transform_indices = @transform_0, window_bounds = array<i64: 800, 3>}, {pipeline_mode = #tpu.pipeline_mode<synchronous>, transform_indices = @transform_1, window_bounds = array<i64: 3, 32>}, {pipeline_mode = #tpu.pipeline_mode<synchronous>, transform_indices = @transform_2, window_bounds = array<i64: 1, 32>}, {pipeline_mode = #tpu.pipeline_mode<synchronous>, transform_indices = @transform_3, window_bounds = array<i64: 32, 32>}, {pipeline_mode = #tpu.pipeline_mode<synchronous>, transform_indices = @transform_4, window_bounds = array<i64: 1, 32>}, {pipeline_mode = #tpu.pipeline_mode<synchronous>, transform_indices = @transform_5, window_bounds = array<i64: 32, 64>}, {pipeline_mode = #tpu.pipeline_mode<synchronous>, transform_indices = @transform_6, window_bounds = array<i64: 1, 64>}, {pipeline_mode = #tpu.pipeline_mode<synchronous>, transform_indices = @transform_7, window_bounds = array<i64: 64, 64>}, {pipeline_mode = #tpu.pipeline_mode<synchronous>, transform_indices = @transform_8, window_bounds = array<i64: 1, 64>}, {pipeline_mode = #tpu.pipeline_mode<synchronous>, transform_indices = @transform_9, window_bounds = array<i64: 64, 128>}, {pipeline_mode = #tpu.pipeline_mode<synchronous>, transform_indices = @transform_10, window_bounds = array<i64: 1, 128>}, {pipeline_mode = #tpu.pipeline_mode<synchronous>, transform_indices = @transform_11, window_bounds = array<i64: 128, 128>}, {pipeline_mode = #tpu.pipeline_mode<synchronous>, transform_indices = @transform_12, window_bounds = array<i64: 1, 128>}, {transform_indices = @transform_13, window_bounds = array<i64: 8, 128>}]} {
    %c0 = arith.constant 0 : index
    %c0_0 = arith.constant 0 : index
    %0 = vector.load %arg1[%c0, %c0_0] : memref<800x3xf32, #tpu.memory_space<vmem>>, vector<800x3xf32>
    %1 = arith.truncf %0 : vector<800x3xf32> to vector<800x3xbf16>
    %c0_1 = arith.constant 0 : index
    %c0_2 = arith.constant 0 : index
    %2 = vector.load %arg2[%c0_1, %c0_2] : memref<3x32xbf16, #tpu.memory_space<vmem>>, vector<3x32xbf16>
    %cst = arith.constant dense<0.000000e+00> : vector<800x32xf32>
    %3 = tpu.matmul %1, %2, %cst {dimension_numbers = #tpu.dot_dimension_numbers<[1], [0], [0], [1], [0, 0, 1, 1], [], []>} : vector<800x3xbf16>, vector<3x32xbf16>, vector<800x32xf32> -> vector<800x32xf32>
    %c0_3 = arith.constant 0 : index
    %c0_4 = arith.constant 0 : index
    %4 = vector.load %arg3[%c0_3, %c0_4] : memref<1x32xf32, #tpu.memory_space<vmem>>, vector<1x32xf32>
    %5 = vector.broadcast %4 : vector<1x32xf32> to vector<800x32xf32>
    %6 = arith.addf %3, %5 : vector<800x32xf32>
    %cst_5 = arith.constant 0.000000e+00 : f32
    %7 = vector.broadcast %cst_5 : f32 to vector<800x32xf32>
    %8 = arith.maximumf %6, %7 : vector<800x32xf32>
    %9 = arith.truncf %8 : vector<800x32xf32> to vector<800x32xbf16>
    %c0_6 = arith.constant 0 : index
    %c0_7 = arith.constant 0 : index
    %10 = vector.load %arg4[%c0_6, %c0_7] : memref<32x32xbf16, #tpu.memory_space<vmem>>, vector<32x32xbf16>
    %cst_8 = arith.constant dense<0.000000e+00> : vector<800x32xf32>
    %11 = tpu.matmul %9, %10, %cst_8 {dimension_numbers = #tpu.dot_dimension_numbers<[1], [0], [0], [1], [0, 0, 1, 1], [], []>} : vector<800x32xbf16>, vector<32x32xbf16>, vector<800x32xf32> -> vector<800x32xf32>
    %c0_9 = arith.constant 0 : index
    %c0_10 = arith.constant 0 : index
    %12 = vector.load %arg5[%c0_9, %c0_10] : memref<1x32xf32, #tpu.memory_space<vmem>>, vector<1x32xf32>
    %13 = vector.broadcast %12 : vector<1x32xf32> to vector<800x32xf32>
    %14 = arith.addf %11, %13 : vector<800x32xf32>
    %cst_11 = arith.constant 0.000000e+00 : f32
    %15 = vector.broadcast %cst_11 : f32 to vector<800x32xf32>
    %16 = arith.maximumf %14, %15 : vector<800x32xf32>
    %17 = vector.extract_strided_slice %16 {offsets = [0, 0], sizes = [160, 32], strides = [1, 1]} : vector<800x32xf32> to vector<160x32xf32>
    %18 = vector.extract_strided_slice %16 {offsets = [160, 0], sizes = [160, 32], strides = [1, 1]} : vector<800x32xf32> to vector<160x32xf32>
    %19 = arith.maximumf %17, %18 : vector<160x32xf32>
    %20 = vector.extract_strided_slice %16 {offsets = [320, 0], sizes = [160, 32], strides = [1, 1]} : vector<800x32xf32> to vector<160x32xf32>
    %21 = arith.maximumf %19, %20 : vector<160x32xf32>
    %22 = vector.extract_strided_slice %16 {offsets = [480, 0], sizes = [160, 32], strides = [1, 1]} : vector<800x32xf32> to vector<160x32xf32>
    %23 = arith.maximumf %21, %22 : vector<160x32xf32>
    %24 = vector.extract_strided_slice %16 {offsets = [640, 0], sizes = [160, 32], strides = [1, 1]} : vector<800x32xf32> to vector<160x32xf32>
    %25 = arith.maximumf %23, %24 : vector<160x32xf32>
    %26 = arith.truncf %25 : vector<160x32xf32> to vector<160x32xbf16>
    %c0_12 = arith.constant 0 : index
    %c0_13 = arith.constant 0 : index
    %27 = vector.load %arg6[%c0_12, %c0_13] : memref<32x64xbf16, #tpu.memory_space<vmem>>, vector<32x64xbf16>
    %cst_14 = arith.constant dense<0.000000e+00> : vector<160x64xf32>
    %28 = tpu.matmul %26, %27, %cst_14 {dimension_numbers = #tpu.dot_dimension_numbers<[1], [0], [0], [1], [0, 0, 1, 1], [], []>} : vector<160x32xbf16>, vector<32x64xbf16>, vector<160x64xf32> -> vector<160x64xf32>
    %c0_15 = arith.constant 0 : index
    %c0_16 = arith.constant 0 : index
    %29 = vector.load %arg7[%c0_15, %c0_16] : memref<1x64xf32, #tpu.memory_space<vmem>>, vector<1x64xf32>
    %30 = vector.broadcast %29 : vector<1x64xf32> to vector<160x64xf32>
    %31 = arith.addf %28, %30 : vector<160x64xf32>
    %cst_17 = arith.constant 0.000000e+00 : f32
    %32 = vector.broadcast %cst_17 : f32 to vector<160x64xf32>
    %33 = arith.maximumf %31, %32 : vector<160x64xf32>
    %34 = arith.truncf %33 : vector<160x64xf32> to vector<160x64xbf16>
    %c0_18 = arith.constant 0 : index
    %c0_19 = arith.constant 0 : index
    %35 = vector.load %arg8[%c0_18, %c0_19] : memref<64x64xbf16, #tpu.memory_space<vmem>>, vector<64x64xbf16>
    %cst_20 = arith.constant dense<0.000000e+00> : vector<160x64xf32>
    %36 = tpu.matmul %34, %35, %cst_20 {dimension_numbers = #tpu.dot_dimension_numbers<[1], [0], [0], [1], [0, 0, 1, 1], [], []>} : vector<160x64xbf16>, vector<64x64xbf16>, vector<160x64xf32> -> vector<160x64xf32>
    %c0_21 = arith.constant 0 : index
    %c0_22 = arith.constant 0 : index
    %37 = vector.load %arg9[%c0_21, %c0_22] : memref<1x64xf32, #tpu.memory_space<vmem>>, vector<1x64xf32>
    %38 = vector.broadcast %37 : vector<1x64xf32> to vector<160x64xf32>
    %39 = arith.addf %36, %38 : vector<160x64xf32>
    %cst_23 = arith.constant 0.000000e+00 : f32
    %40 = vector.broadcast %cst_23 : f32 to vector<160x64xf32>
    %41 = arith.maximumf %39, %40 : vector<160x64xf32>
    %42 = vector.extract_strided_slice %41 {offsets = [0, 0], sizes = [32, 64], strides = [1, 1]} : vector<160x64xf32> to vector<32x64xf32>
    %43 = vector.extract_strided_slice %41 {offsets = [32, 0], sizes = [32, 64], strides = [1, 1]} : vector<160x64xf32> to vector<32x64xf32>
    %44 = arith.maximumf %42, %43 : vector<32x64xf32>
    %45 = vector.extract_strided_slice %41 {offsets = [64, 0], sizes = [32, 64], strides = [1, 1]} : vector<160x64xf32> to vector<32x64xf32>
    %46 = arith.maximumf %44, %45 : vector<32x64xf32>
    %47 = vector.extract_strided_slice %41 {offsets = [96, 0], sizes = [32, 64], strides = [1, 1]} : vector<160x64xf32> to vector<32x64xf32>
    %48 = arith.maximumf %46, %47 : vector<32x64xf32>
    %49 = vector.extract_strided_slice %41 {offsets = [128, 0], sizes = [32, 64], strides = [1, 1]} : vector<160x64xf32> to vector<32x64xf32>
    %50 = arith.maximumf %48, %49 : vector<32x64xf32>
    %51 = arith.truncf %50 : vector<32x64xf32> to vector<32x64xbf16>
    %c0_24 = arith.constant 0 : index
    %c0_25 = arith.constant 0 : index
    %52 = vector.load %arg10[%c0_24, %c0_25] : memref<64x128xbf16, #tpu.memory_space<vmem>>, vector<64x128xbf16>
    %cst_26 = arith.constant dense<0.000000e+00> : vector<32x128xf32>
    %53 = tpu.matmul %51, %52, %cst_26 {dimension_numbers = #tpu.dot_dimension_numbers<[1], [0], [0], [1], [0, 0, 1, 1], [], []>} : vector<32x64xbf16>, vector<64x128xbf16>, vector<32x128xf32> -> vector<32x128xf32>
    %c0_27 = arith.constant 0 : index
    %c0_28 = arith.constant 0 : index
    %54 = vector.load %arg11[%c0_27, %c0_28] : memref<1x128xf32, #tpu.memory_space<vmem>>, vector<1x128xf32>
    %55 = vector.broadcast %54 : vector<1x128xf32> to vector<32x128xf32>
    %56 = arith.addf %53, %55 : vector<32x128xf32>
    %cst_29 = arith.constant 0.000000e+00 : f32
    %57 = vector.broadcast %cst_29 : f32 to vector<32x128xf32>
    %58 = arith.maximumf %56, %57 : vector<32x128xf32>
    %59 = arith.truncf %58 : vector<32x128xf32> to vector<32x128xbf16>
    %c0_30 = arith.constant 0 : index
    %c0_31 = arith.constant 0 : index
    %60 = vector.load %arg12[%c0_30, %c0_31] : memref<128x128xbf16, #tpu.memory_space<vmem>>, vector<128x128xbf16>
    %cst_32 = arith.constant dense<0.000000e+00> : vector<32x128xf32>
    %61 = tpu.matmul %59, %60, %cst_32 {dimension_numbers = #tpu.dot_dimension_numbers<[1], [0], [0], [1], [0, 0, 1, 1], [], []>} : vector<32x128xbf16>, vector<128x128xbf16>, vector<32x128xf32> -> vector<32x128xf32>
    %c0_33 = arith.constant 0 : index
    %c0_34 = arith.constant 0 : index
    %62 = vector.load %arg13[%c0_33, %c0_34] : memref<1x128xf32, #tpu.memory_space<vmem>>, vector<1x128xf32>
    %63 = vector.broadcast %62 : vector<1x128xf32> to vector<32x128xf32>
    %64 = arith.addf %61, %63 : vector<32x128xf32>
    %cst_35 = arith.constant 0.000000e+00 : f32
    %65 = vector.broadcast %cst_35 : f32 to vector<32x128xf32>
    %66 = arith.maximumf %64, %65 : vector<32x128xf32>
    %67 = vector.extract_strided_slice %66 {offsets = [0, 0], sizes = [8, 128], strides = [1, 1]} : vector<32x128xf32> to vector<8x128xf32>
    %68 = vector.extract_strided_slice %66 {offsets = [8, 0], sizes = [8, 128], strides = [1, 1]} : vector<32x128xf32> to vector<8x128xf32>
    %69 = arith.maximumf %67, %68 : vector<8x128xf32>
    %70 = vector.extract_strided_slice %66 {offsets = [16, 0], sizes = [8, 128], strides = [1, 1]} : vector<32x128xf32> to vector<8x128xf32>
    %71 = arith.maximumf %69, %70 : vector<8x128xf32>
    %72 = vector.extract_strided_slice %66 {offsets = [24, 0], sizes = [8, 128], strides = [1, 1]} : vector<32x128xf32> to vector<8x128xf32>
    %73 = arith.maximumf %71, %72 : vector<8x128xf32>
    %c0_36 = arith.constant 0 : index
    %c0_37 = arith.constant 0 : index
    %74 = vector.load %arg14[%c0_36, %c0_37] : memref<8x128xf32, #tpu.memory_space<vmem>>, vector<8x128xf32>
    tpu.vector_store %arg14[%c0_36, %c0_37], %73 {strides = array<i32>} : memref<8x128xf32, #tpu.memory_space<vmem>>, vector<8x128xf32>,
    return
  }
  func.func @transform_0(%arg0: i32) -> (i32, i32) {
    %c0_i32 = arith.constant 0 : i32
    %c0_i32_0 = arith.constant 0 : i32
    return %arg0, %c0_i32 : i32, i32
  }
  func.func @transform_1(%arg0: i32) -> (i32, i32) {
    %c0_i32 = arith.constant 0 : i32
    %c0_i32_0 = arith.constant 0 : i32
    %c0_i32_1 = arith.constant 0 : i32
    return %c0_i32, %c0_i32_0 : i32, i32
  }
  func.func @transform_2(%arg0: i32) -> (i32, i32) {
    %c0_i32 = arith.constant 0 : i32
    %c0_i32_0 = arith.constant 0 : i32
    %c0_i32_1 = arith.constant 0 : i32
    return %c0_i32, %c0_i32_0 : i32, i32
  }
  func.func @transform_3(%arg0: i32) -> (i32, i32) {
    %c0_i32 = arith.constant 0 : i32
    %c0_i32_0 = arith.constant 0 : i32
    %c0_i32_1 = arith.constant 0 : i32
    return %c0_i32, %c0_i32_0 : i32, i32
  }
  func.func @transform_4(%arg0: i32) -> (i32, i32) {
    %c0_i32 = arith.constant 0 : i32
    %c0_i32_0 = arith.constant 0 : i32
    %c0_i32_1 = arith.constant 0 : i32
    return %c0_i32, %c0_i32_0 : i32, i32
  }
  func.func @transform_5(%arg0: i32) -> (i32, i32) {
    %c0_i32 = arith.constant 0 : i32
    %c0_i32_0 = arith.constant 0 : i32
    %c0_i32_1 = arith.constant 0 : i32
    return %c0_i32, %c0_i32_0 : i32, i32
  }
  func.func @transform_6(%arg0: i32) -> (i32, i32) {
    %c0_i32 = arith.constant 0 : i32
    %c0_i32_0 = arith.constant 0 : i32
    %c0_i32_1 = arith.constant 0 : i32
    return %c0_i32, %c0_i32_0 : i32, i32
  }
  func.func @transform_7(%arg0: i32) -> (i32, i32) {
    %c0_i32 = arith.constant 0 : i32
    %c0_i32_0 = arith.constant 0 : i32
    %c0_i32_1 = arith.constant 0 : i32
    return %c0_i32, %c0_i32_0 : i32, i32
  }
  func.func @transform_8(%arg0: i32) -> (i32, i32) {
    %c0_i32 = arith.constant 0 : i32
    %c0_i32_0 = arith.constant 0 : i32
    %c0_i32_1 = arith.constant 0 : i32
    return %c0_i32, %c0_i32_0 : i32, i32
  }
  func.func @transform_9(%arg0: i32) -> (i32, i32) {
    %c0_i32 = arith.constant 0 : i32
    %c0_i32_0 = arith.constant 0 : i32
    %c0_i32_1 = arith.constant 0 : i32
    return %c0_i32, %c0_i32_0 : i32, i32
  }
  func.func @transform_10(%arg0: i32) -> (i32, i32) {
    %c0_i32 = arith.constant 0 : i32
    %c0_i32_0 = arith.constant 0 : i32
    %c0_i32_1 = arith.constant 0 : i32
    return %c0_i32, %c0_i32_0 : i32, i32
  }
  func.func @transform_11(%arg0: i32) -> (i32, i32) {
    %c0_i32 = arith.constant 0 : i32
    %c0_i32_0 = arith.constant 0 : i32
    %c0_i32_1 = arith.constant 0 : i32
    return %c0_i32, %c0_i32_0 : i32, i32
  }
  func.func @transform_12(%arg0: i32) -> (i32, i32) {
    %c0_i32 = arith.constant 0 : i32
    %c0_i32_0 = arith.constant 0 : i32
    %c0_i32_1 = arith.constant 0 : i32
    return %c0_i32, %c0_i32_0 : i32, i32
  }
  func.func @transform_13(%arg0: i32) -> (i32, i32) {
    %c0_i32 = arith.constant 0 : i32
    %c0_i32_0 = arith.constant 0 : i32
    return %arg0, %c0_i32 : i32, i32
  }
}

</mosaic_0001>

<bundles_post_ra>
// kernel: tpu_custom_call.1
= control target key start
LH: loop header
LB: loop body
LE: loop exit
PB: predicated region body
PF: predicated region fallthrough
CT: control target
= control target key end

     0   :  { %vm355_vm0 = vcmask 1040384   ;;  %vm356_vm1 = vcmask 1041408   ;;  %v3028_v2 = vmov 65535   ;;  %vm204_vm2 = vcmask 23552   ;;  %s4015_s0 = inlined_call_operand.vmem [shape: f32[800,3], index: 0, kind: input, shape index: {}]   ;;  %s4016_s1 = inlined_call_operand.vmem [shape: bf16[3,32], index: 1, kind: input, shape index: {}]   ;;  %s4017_s2 = inlined_call_operand.vmem [shape: f32[1,32], index: 2, kind: input, shape index: {}]   ;;  %s4018_s3 = inlined_call_operand.vmem [shape: bf16[32,32], index: 3, kind: input, shape index: {}]   ;;  %s4019_s4 = inlined_call_operand.vmem [shape: f32[1,32], index: 4, kind: input, shape index: {}]   ;;  %s4020_s5 = inlined_call_operand.vmem [shape: bf16[32,64], index: 5, kind: input, shape index: {}]   ;;  %s4021_s6 = inlined_call_operand.vmem [shape: f32[1,64], index: 6, kind: input, shape index: {}]   ;;  %s4022_s7 = inlined_call_operand.vmem [shape: bf16[64,64], index: 7, kind: input, shape index: {}]   ;;  %s4023_s8 = inlined_call_operand.vmem [shape: f32[1,64], index: 8, kind: input, shape index: {}]   ;;  %s4024_s9 = inlined_call_operand.vmem [shape: bf16[64,128], index: 9, kind: input, shape index: {}]   ;;  %s4025_s10 = inlined_call_operand.vmem [shape: f32[1,128], index: 10, kind: input, shape index: {}]   ;;  %s4026_s11 = inlined_call_operand.vmem [shape: bf16[128,128], index: 11, kind: input, shape index: {}]   ;;  %s4027_s12 = inlined_call_operand.vmem [shape: f32[1,128], index: 12, kind: input, shape index: {}]   ;;  %s4028_s13 = inlined_call_operand.hbm [shape: f32[8,128], index: 13, kind: output, shape index: {}]  }
   0x1   :  { %v196_v0 = vld [vmem:[%s4016_s1] sm:$0x3]  ;;  %v357_v3 = vsel %vm355_vm0, 4294967295, %v3028_v2  ;;  %v47_v4 = vld [vmem:[%s4015_s0 + $0x8] sm:$0xff]  ;;  %v48_v7 = vld [vmem:[%s4015_s0 + $0x10] sm:$0xff] }
   0x2   :  { %v46_v1 = vld [vmem:[%s4015_s0] sm:$0xff]  ;;  %v358_v5 = vsel %vm356_vm1, %v357_v3, 0  ;;  %v49_v8 = vld [vmem:[%s4015_s0 + $0x18] sm:$0xff]  ;;  %v51_v11 = vld [vmem:[%s4015_s0 + $0x28] sm:$0xff] }
   0x3   :  { %v146_v6 = vpack.c.bf16 %v47_v4, %v46_v1  ;;  %v360_v9 = vand.u32 %v358_v5, %v196_v0  ;;  %v50_v10 = vld [vmem:[%s4015_s0 + $0x20] sm:$0xff]  ;;  %v147_v12 = vpack.c.bf16 %v49_v8, %v48_v7  ;;  %v52_v14 = vld [vmem:[%s4015_s0 + $0x30] sm:$0xff]  ;;  %v53_v15 = vld [vmem:[%s4015_s0 + $0x38] sm:$0xff] }
   0x4   :  { %v148_v13 = vpack.c.bf16 %v51_v11, %v50_v10  ;;  %v54_v16 = vld [vmem:[%s4015_s0 + $0x40] sm:$0xff]  ;;  %v55_v17 = vld [vmem:[%s4015_s0 + $0x48] sm:$0xff]  ;;  %v149_v18 = vpack.c.bf16 %v53_v15, %v52_v14  ;;  %v56_v20 = vld [vmem:[%s4015_s0 + $0x50] sm:$0xff] }
   0x5   :  { %2696 = vmatprep.mubr.msk.bf16.mxu0 %vm204_vm2, %v146_v6  ;;  %2694 = vmatprep.subr.bf16.mxu0 %v360_v9  ;;  %v150_v19 = vpack.c.bf16 %v55_v17, %v54_v16  ;;  %v57_v21 = vld [vmem:[%s4015_s0 + $0x58] sm:$0xff]  ;;  %v58_v22 = vld [vmem:[%s4015_s0 + $0x60] sm:$0xff]  ;;  %v59_v23 = vld [vmem:[%s4015_s0 + $0x68] sm:$0xff] }
   0x6   :  { %2695 = vmatpush3.bf16.msra.mxu0 %v360_v9  ;;  %v151_v24 = vpack.c.bf16 %v57_v21, %v56_v20  ;;  %v152_v25 = vpack.c.bf16 %v59_v23, %v58_v22  ;;  %v60_v26 = vld [vmem:[%s4015_s0 + $0x70] sm:$0xff]  ;;  %v61_v27 = vld [vmem:[%s4015_s0 + $0x78] sm:$0xff]  ;;  %v62_v28 = vld [vmem:[%s4015_s0 + $0x80] sm:$0xff] }
   0x7   :  { %v63_v29 = vld [vmem:[%s4015_s0 + $0x88] sm:$0xff]  ;;  %v153_v30 = vpack.c.bf16 %v61_v27, %v60_v26  ;;  %v64_v32 = vld [vmem:[%s4015_s0 + $0x90] sm:$0xff]  ;;  %v65_v33 = vld [vmem:[%s4015_s0 + $0x98] sm:$0xff] }
   0x8   :  { %v154_v31 = vpack.c.bf16 %v63_v29, %v62_v28  ;;  %v66_v34 = vld [vmem:[%s4015_s0 + $0xa0] sm:$0xff]  ;;  %v67_v35 = vld [vmem:[%s4015_s0 + $0xa8] sm:$0xff]  ;;  %v155_v36 = vpack.c.bf16 %v65_v33, %v64_v32  ;;  %v68_v38 = vld [vmem:[%s4015_s0 + $0xb0] sm:$0xff] }
   0x9   :  { %2697 = vmatmul.mubr.msk.bf16.vlgmr.msra.gmra.mxu0 %vm204_vm2, %v147_v12  ;;  %v156_v37 = vpack.c.bf16 %v67_v35, %v66_v34  ;;  %v69_v39 = vld [vmem:[%s4015_s0 + $0xb8] sm:$0xff]  ;;  %v70_v40 = vld [vmem:[%s4015_s0 + $0xc0] sm:$0xff]  ;;  %v71_v41 = vld [vmem:[%s4015_s0 + $0xc8] sm:$0xff] }
   0xa   :  { %2700 = vmatprep.mubr.msk.bf16.mxu0 %vm204_vm2, %v148_v13 }
  0x11   :  { %2701 = vmatmul.mubr.msk.bf16.gmra.mxu0 %vm204_vm2, %v149_v18 }
  0x12   :  { %2704 = vmatprep.mubr.msk.bf16.mxu0 %vm204_vm2, %v150_v19 }
  0x19   :  { %2705 = vmatmul.mubr.msk.bf16.gmra.mxu0 %vm204_vm2, %v151_v24 }
  0x1a   :  { %2708 = vmatprep.mubr.msk.bf16.mxu0 %vm204_vm2, %v152_v25 }
  0x21   :  { %2709 = vmatmul.mubr.msk.bf16.gmra.mxu0 %vm204_vm2, %v153_v30 }
  0x22   :  { %2712 = vmatprep.mubr.msk.bf16.mxu0 %vm204_vm2, %v154_v31 }
  0x29   :  { %2713 = vmatmul.mubr.msk.bf16.gmra.mxu0 %vm204_vm2, %v155_v36 }
  0x2a   :  { %2716 = vmatprep.mubr.msk.bf16.mxu0 %vm204_vm2, %v156_v37 }
  0x2b   :  { %18 = vsyncpa [#allocation3], 0  ;;  %v157_v42 = vpack.c.bf16 %v69_v39, %v68_v38  ;;  %v158_v43 = vpack.c.bf16 %v71_v41, %v70_v40  ;;  %v72_v44 = vld [vmem:[%s4015_s0 + $0xd0] sm:$0xff]  ;;  %v73_v45 = vld [vmem:[%s4015_s0 + $0xd8] sm:$0xff]  ;;  %vm968_vm3 = vcmask 261120   ;;  %vm1977_vm4 = vcmask 523264  }
  0x2c   :  { %v74_v46 = vld [vmem:[%s4015_s0 + $0xe0] sm:$0xff]  ;;  %v75_v47 = vld [vmem:[%s4015_s0 + $0xe8] sm:$0xff]  ;;  %v159_v48 = vpack.c.bf16 %v73_v45, %v72_v44  ;;  %v76_v50 = vld [vmem:[%s4015_s0 + $0xf0] sm:$0xff] }
  0x2d   :  { %v160_v49 = vpack.c.bf16 %v75_v47, %v74_v46  ;;  %v77_v51 = vld [vmem:[%s4015_s0 + $0xf8] sm:$0xff]  ;;  %v78_v52 = vld [vmem:[%s4015_s0 + $0x100] sm:$0xff]  ;;  %v79_v53 = vld [vmem:[%s4015_s0 + $0x108] sm:$0xff] }
  0x2e   :  { %v161_v54 = vpack.c.bf16 %v77_v51, %v76_v50  ;;  %v162_v55 = vpack.c.bf16 %v79_v53, %v78_v52  ;;  %v80_v56 = vld [vmem:[%s4015_s0 + $0x110] sm:$0xff]  ;;  %v81_v57 = vld [vmem:[%s4015_s0 + $0x118] sm:$0xff]  ;;  %v82_v58 = vld [vmem:[%s4015_s0 + $0x120] sm:$0xff] }
  0x2f   :  { %v83_v59 = vld [vmem:[%s4015_s0 + $0x128] sm:$0xff]  ;;  %v163_v60 = vpack.c.bf16 %v81_v57, %v80_v56  ;;  %v84_v62 = vld [vmem:[%s4015_s0 + $0x130] sm:$0xff]  ;;  %v85_v63 = vld [vmem:[%s4015_s0 + $0x138] sm:$0xff] }
  0x30   :  { %v164_v61 = vpack.c.bf16 %v83_v59, %v82_v58  ;;  %v86_v0 = vld [vmem:[%s4015_s0 + $0x140] sm:$0xff]  ;;  %v87_v1 = vld [vmem:[%s4015_s0 + $0x148] sm:$0xff]  ;;  %v165_v2 = vpack.c.bf16 %v85_v63, %v84_v62  ;;  %v88_v6 = vld [vmem:[%s4015_s0 + $0x150] sm:$0xff] }
  0x31   :  { %2717 = vmatmul.mubr.msk.bf16.gmra.mxu0 %vm204_vm2, %v157_v42  ;;  %v2986_v3 = vld [vmem:[%s4018_s3 + $0x8] sm:$0xff]   ;;  %v166_v4 = vpack.c.bf16 %v87_v1, %v86_v0  ;;  %v2987_v5 = vld [vmem:[%s4018_s3] sm:$0xff]   ;;  %v89_v7 = vld [vmem:[%s4015_s0 + $0x158] sm:$0xff] }
  0x32   :  { %2720 = vmatprep.mubr.msk.bf16.mxu0 %vm204_vm2, %v158_v43  ;;  %2796 = vmatprep.subr.bf16.mxu1 %v2986_v3  ;;  %v90_v8 = vld [vmem:[%s4015_s0 + $0x160] sm:$0xff]  ;;  %v91_v9 = vld [vmem:[%s4015_s0 + $0x168] sm:$0xff]  ;;  %v167_v10 = vpack.c.bf16 %v89_v7, %v88_v6  ;;  %v92_v12 = vld [vmem:[%s4015_s0 + $0x170] sm:$0xff] }
  0x33   :  { %2797 = vmatpush3.bf16.msra.mxu1 %v2986_v3  ;;  %v168_v11 = vpack.c.bf16 %v91_v9, %v90_v8  ;;  %v93_v13 = vld [vmem:[%s4015_s0 + $0x178] sm:$0xff]  ;;  %v94_v14 = vld [vmem:[%s4015_s0 + $0x180] sm:$0xff]  ;;  %v95_v15 = vld [vmem:[%s4015_s0 + $0x188] sm:$0xff] }
  0x34   :  { %2798 = vmatprep.subr.bf16.mxu1 %v2987_v5  ;;  %v169_v16 = vpack.c.bf16 %v93_v13, %v92_v12  ;;  %v170_v17 = vpack.c.bf16 %v95_v15, %v94_v14  ;;  %v96_v18 = vld [vmem:[%s4015_s0 + $0x190] sm:$0xff]  ;;  %v97_v19 = vld [vmem:[%s4015_s0 + $0x198] sm:$0xff]  ;;  %v98_v20 = vld [vmem:[%s4015_s0 + $0x1a0] sm:$0xff] }
  0x35   :  { %v99_v21 = vld [vmem:[%s4015_s0 + $0x1a8] sm:$0xff]  ;;  %v171_v22 = vpack.c.bf16 %v97_v19, %v96_v18  ;;  %v100_v24 = vld [vmem:[%s4015_s0 + $0x1b0] sm:$0xff]  ;;  %v101_v25 = vld [vmem:[%s4015_s0 + $0x1b8] sm:$0xff] }
  0x36   :  { %v172_v23 = vpack.c.bf16 %v99_v21, %v98_v20  ;;  %v102_v26 = vld [vmem:[%s4015_s0 + $0x1c0] sm:$0xff]  ;;  %v103_v27 = vld [vmem:[%s4015_s0 + $0x1c8] sm:$0xff]  ;;  %v173_v28 = vpack.c.bf16 %v101_v25, %v100_v24  ;;  %v104_v30 = vld [vmem:[%s4015_s0 + $0x1d0] sm:$0xff] }
  0x37   :  { %2799 = vmatpush3.bf16.msra.mxu1 %v2987_v5  ;;  %v174_v29 = vpack.c.bf16 %v103_v27, %v102_v26  ;;  %v105_v31 = vld [vmem:[%s4015_s0 + $0x1d8] sm:$0xff]  ;;  %v106_v32 = vld [vmem:[%s4015_s0 + $0x1e0] sm:$0xff]  ;;  %v107_v33 = vld [vmem:[%s4015_s0 + $0x1e8] sm:$0xff] }
  0x38   :  { %v175_v34 = vpack.c.bf16 %v105_v31, %v104_v30  ;;  %v176_v35 = vpack.c.bf16 %v107_v33, %v106_v32  ;;  %v108_v36 = vld [vmem:[%s4015_s0 + $0x1f0] sm:$0xff]  ;;  %v109_v37 = vld [vmem:[%s4015_s0 + $0x1f8] sm:$0xff]  ;;  %v110_v38 = vld [vmem:[%s4015_s0 + $0x200] sm:$0xff] }
  0x39   :  { %2721 = vmatmul.mubr.msk.bf16.gmra.mxu0 %vm204_vm2, %v159_v48  ;;  %v111_v39 = vld [vmem:[%s4015_s0 + $0x208] sm:$0xff]  ;;  %v177_v40 = vpack.c.bf16 %v109_v37, %v108_v36  ;;  %v112_v42 = vld [vmem:[%s4015_s0 + $0x210] sm:$0xff]  ;;  %v113_v43 = vld [vmem:[%s4015_s0 + $0x218] sm:$0xff] }
  0x3a   :  { %2724 = vmatprep.mubr.msk.bf16.mxu0 %vm204_vm2, %v160_v49  ;;  %v178_v41 = vpack.c.bf16 %v111_v39, %v110_v38  ;;  %v114_v44 = vld [vmem:[%s4015_s0 + $0x220] sm:$0xff]  ;;  %v115_v45 = vld [vmem:[%s4015_s0 + $0x228] sm:$0xff]  ;;  %v179_v46 = vpack.c.bf16 %v113_v43, %v112_v42  ;;  %v116_v48 = vld [vmem:[%s4015_s0 + $0x230] sm:$0xff] }
  0x3b   :  { %v180_v47 = vpack.c.bf16 %v115_v45, %v114_v44  ;;  %v117_v49 = vld [vmem:[%s4015_s0 + $0x238] sm:$0xff]  ;;  %v118_v50 = vld [vmem:[%s4015_s0 + $0x240] sm:$0xff]  ;;  %v119_v51 = vld [vmem:[%s4015_s0 + $0x248] sm:$0xff] }
  0x3c   :  { %v181_v52 = vpack.c.bf16 %v117_v49, %v116_v48  ;;  %v182_v53 = vpack.c.bf16 %v119_v51, %v118_v50  ;;  %v122_v56 = vld [vmem:[%s4015_s0 + $0x260] sm:$0xff]  ;;  %v123_v57 = vld [vmem:[%s4015_s0 + $0x268] sm:$0xff]  ;;  %v129_v3 = vld [vmem:[%s4015_s0 + $0x298] sm:$0xff] }
  0x3d   :  { %v184_v59 = vpack.c.bf16 %v123_v57, %v122_v56  ;;  %v126_v62 = vld [vmem:[%s4015_s0 + $0x280] sm:$0xff]  ;;  %v127_v63 = vld [vmem:[%s4015_s0 + $0x288] sm:$0xff]  ;;  %v132_v8 = vld [vmem:[%s4015_s0 + $0x2b0] sm:$0xff] }
  0x3e   :  { %v186_v1 = vpack.c.bf16 %v127_v63, %v126_v62  ;;  %v131_v5 = vld [vmem:[%s4015_s0 + $0x2a8] sm:$0xff]  ;;  %v133_v9 = vld [vmem:[%s4015_s0 + $0x2b8] sm:$0xff]  ;;  %v136_v14 = vld [vmem:[%s4015_s0 + $0x2d0] sm:$0xff] }
  0x3f   :  { %v189_v12 = vpack.c.bf16 %v133_v9, %v132_v8  ;;  %v137_v15 = vld [vmem:[%s4015_s0 + $0x2d8] sm:$0xff]  ;;  %v140_v20 = vld [vmem:[%s4015_s0 + $0x2f0] sm:$0xff]  ;;  %v3462_v31 = vld [vmem:[%s4017_s2] ss:$0 sm:$0xff] }
  0x40   :  { %v191_v18 = vpack.c.bf16 %v137_v15, %v136_v14  ;;  %v141_v21 = vld [vmem:[%s4015_s0 + $0x2f8] sm:$0xff]  ;;  %v144_v26 = vld [vmem:[%s4015_s0 + $0x310] sm:$0xff] }
  0x41   :  { %2725 = vmatmul.mubr.msk.bf16.gmra.mxu0 %vm204_vm2, %v161_v54  ;;  %v120_v54 = vld [vmem:[%s4015_s0 + $0x250] sm:$0xff]  ;;  %v193_v24 = vpack.c.bf16 %v141_v21, %v140_v20  ;;  %v145_v27 = vld [vmem:[%s4015_s0 + $0x318] sm:$0xff] }
  0x42   :  { %2728 = vmatprep.mubr.msk.bf16.mxu0 %vm204_vm2, %v162_v55  ;;  %v121_v55 = vld [vmem:[%s4015_s0 + $0x258] sm:$0xff] }
  0x43   :  { %v183_v58 = vpack.c.bf16 %v121_v55, %v120_v54 }
  0x49   :  { %2729 = vmatmul.mubr.msk.bf16.gmra.mxu0 %vm204_vm2, %v163_v60  ;;  %v124_v60 = vld [vmem:[%s4015_s0 + $0x270] sm:$0xff] }
  0x4a   :  { %2732 = vmatprep.mubr.msk.bf16.mxu0 %vm204_vm2, %v164_v61  ;;  %v125_v61 = vld [vmem:[%s4015_s0 + $0x278] sm:$0xff] }
  0x4b   :  { %v185_v0 = vpack.c.bf16 %v125_v61, %v124_v60 }
  0x51   :  { %2733 = vmatmul.mubr.msk.bf16.gmra.mxu0 %vm204_vm2, %v165_v2  ;;  %v128_v2 = vld [vmem:[%s4015_s0 + $0x290] sm:$0xff] }
  0x52   :  { %2736 = vmatprep.mubr.msk.bf16.mxu0 %vm204_vm2, %v166_v4  ;;  %v130_v4 = vld [vmem:[%s4015_s0 + $0x2a0] sm:$0xff]  ;;  %v187_v6 = vpack.c.bf16 %v129_v3, %v128_v2 }
  0x53   :  { %v188_v7 = vpack.c.bf16 %v131_v5, %v130_v4 }
  0x59   :  { %2737 = vmatmul.mubr.msk.bf16.gmra.mxu0 %vm204_vm2, %v167_v10  ;;  %v134_v10 = vld [vmem:[%s4015_s0 + $0x2c0] sm:$0xff] }
  0x5a   :  { %2740 = vmatprep.mubr.msk.bf16.mxu0 %vm204_vm2, %v168_v11  ;;  %v135_v11 = vld [vmem:[%s4015_s0 + $0x2c8] sm:$0xff] }
  0x5b   :  { %v190_v13 = vpack.c.bf16 %v135_v11, %v134_v10 }
  0x61   :  { %2741 = vmatmul.mubr.msk.bf16.gmra.mxu0 %vm204_vm2, %v169_v16  ;;  %v138_v16 = vld [vmem:[%s4015_s0 + $0x2e0] sm:$0xff] }
  0x62   :  { %2744 = vmatprep.mubr.msk.bf16.mxu0 %vm204_vm2, %v170_v17  ;;  %v139_v17 = vld [vmem:[%s4015_s0 + $0x2e8] sm:$0xff] }
  0x63   :  { %v192_v19 = vpack.c.bf16 %v139_v17, %v138_v16 }
  0x69   :  { %2745 = vmatmul.mubr.msk.bf16.gmra.mxu0 %vm204_vm2, %v171_v22  ;;  %v142_v22 = vld [vmem:[%s4015_s0 + $0x300] sm:$0xff] }
  0x6a   :  { %2748 = vmatprep.mubr.msk.bf16.mxu0 %vm204_vm2, %v172_v23  ;;  %v143_v23 = vld [vmem:[%s4015_s0 + $0x308] sm:$0xff] }
  0x6b   :  { %v194_v25 = vpack.c.bf16 %v143_v23, %v142_v22 }
  0x71   :  { %2749 = vmatmul.mubr.msk.bf16.gmra.mxu0 %vm204_vm2, %v173_v28  ;;  %v195_v28 = vpack.c.bf16 %v145_v27, %v144_v26 }
  0x72   :  { %2752 = vmatprep.mubr.msk.bf16.mxu0 %vm204_vm2, %v174_v29 }
  0x79   :  { %2753 = vmatmul.mubr.msk.bf16.gmra.mxu0 %vm204_vm2, %v175_v34 }
  0x7a   :  { %2756 = vmatprep.mubr.msk.bf16.mxu0 %vm204_vm2, %v176_v35 }
  0x81   :  { %2757 = vmatmul.mubr.msk.bf16.gmra.mxu0 %vm204_vm2, %v177_v40 }
  0x82   :  { %2760 = vmatprep.mubr.msk.bf16.mxu0 %vm204_vm2, %v178_v41 }
  0x89   :  { %2761 = vmatmul.mubr.msk.bf16.gmra.mxu0 %vm204_vm2, %v179_v46 }
  0x8a   :  { %2764 = vmatprep.mubr.msk.bf16.mxu0 %vm204_vm2, %v180_v47 }
  0x91   :  { %2765 = vmatmul.mubr.msk.bf16.gmra.mxu0 %vm204_vm2, %v181_v52 }
  0x92   :  { %2768 = vmatprep.mubr.msk.bf16.mxu0 %vm204_vm2, %v182_v53 }
  0x99   :  { %2769 = vmatmul.mubr.msk.bf16.gmra.mxu0 %vm204_vm2, %v183_v58 }
  0x9a   :  { %2772 = vmatprep.mubr.msk.bf16.mxu0 %vm204_vm2, %v184_v59 }
  0xa1   :  { %2773 = vmatmul.mubr.msk.bf16.gmra.mxu0 %vm204_vm2, %v185_v0 }
  0xa2   :  { %2776 = vmatprep.mubr.msk.bf16.mxu0 %vm204_vm2, %v186_v1 }
  0xa9   :  { %2777 = vmatmul.mubr.msk.bf16.gmra.mxu0 %vm204_vm2, %v187_v6 }
  0xaa   :  { %2780 = vmatprep.mubr.msk.bf16.mxu0 %vm204_vm2, %v188_v7 }
  0xb1   :  { %2781 = vmatmul.mubr.msk.bf16.gmra.mxu0 %vm204_vm2, %v189_v12 }
  0xb2   :  { %2784 = vmatprep.mubr.msk.bf16.mxu0 %vm204_vm2, %v190_v13 }
  0xb9   :  { %2785 = vmatmul.mubr.msk.bf16.gmra.mxu0 %vm204_vm2, %v191_v18 }
  0xba   :  { %2788 = vmatprep.mubr.msk.bf16.mxu0 %vm204_vm2, %v192_v19 }
  0xc1   :  { %2789 = vmatmul.mubr.msk.bf16.gmra.mxu0 %vm204_vm2, %v193_v24 }
  0xc2   :  { %2792 = vmatprep.mubr.msk.bf16.mxu0 %vm204_vm2, %v194_v25 }
  0xc9   :  { %v2698_v29 = vpop.f32.mrf.mxu0  ;;  %2793 = vmatmul.mubr.msk.bf16.gmra.mxu0 %vm204_vm2, %v195_v28 }
  0xca   :  { %v405_v35 = vadd.f32 %v2698_v29, %v3462_v31 }
  0xcb   :  { %v396_v30 = vpop.f32.mrf.mxu0 }
  0xcc   :  { %v397_v33 = vadd.f32 %v3462_v31, %v396_v30  ;;  %v797_v42 = vmax.f32 %v405_v35, 0.0 }
  0xcd   :  { %v2699_v32 = vpop.f32.mrf.mxu0 }
  0xce   :  { %v408_v34 = vadd.f32 %v2699_v32, %v3462_v31  ;;  %v795_v40 = vmax.f32 %v397_v33, 0.0 }
  0xcf   :  { %v399_v36 = vpop.f32.mrf.mxu0 }
  0xd0   :  { %v400_v37 = vadd.f32 %v3462_v31, %v399_v36  ;;  %v798_v38 = vmax.f32 %v408_v34, 0.0 }
  0xd1   :  { %v2702_v39 = vpop.f32.mrf.mxu0 }
  0xd2   :  { %v796_v41 = vmax.f32 %v400_v37, 0.0  ;;  %v896_v45 = vpack.c.bf16 %v798_v38, %v797_v42  ;;  %v421_v49 = vadd.f32 %v2702_v39, %v3462_v31 }
  0xd3   :  { %v412_v43 = vpop.f32.mrf.mxu0 }
  0xd4   :  { %v895_v44 = vpack.c.bf16 %v796_v41, %v795_v40  ;;  %v413_v47 = vadd.f32 %v3462_v31, %v412_v43  ;;  %v801_v56 = vmax.f32 %v421_v49, 0.0 }
  0xd5   :  { %v2703_v46 = vpop.f32.mrf.mxu0 }
  0xd6   :  { %v424_v48 = vadd.f32 %v2703_v46, %v3462_v31  ;;  %2800 = vmatprep.mubr.msk.bf16.mxu1 %vm968_vm3, %v895_v44  ;;  %v799_v54 = vmax.f32 %v413_v47, 0.0 }
  0xd7   :  { %v415_v50 = vpop.f32.mrf.mxu0  ;;  %2801 = vmatmul.mubr.msk.bf16.vlgmr.msra.gmra.mxu1 %vm968_vm3, %v896_v45 }
  0xd8   :  { %v416_v51 = vadd.f32 %v3462_v31, %v415_v50  ;;  %v802_v52 = vmax.f32 %v424_v48, 0.0 }
  0xd9   :  { %v2706_v53 = vpop.f32.mrf.mxu0 }
  0xda   :  { %v800_v55 = vmax.f32 %v416_v51, 0.0  ;;  %v898_v59 = vpack.c.bf16 %v802_v52, %v801_v56  ;;  %v437_v63 = vadd.f32 %v2706_v53, %v3462_v31 }
  0xdb   :  { %v428_v57 = vpop.f32.mrf.mxu0 }
  0xdc   :  { %v897_v58 = vpack.c.bf16 %v800_v55, %v799_v54  ;;  %v429_v61 = vadd.f32 %v3462_v31, %v428_v57  ;;  %v805_v6 = vmax.f32 %v437_v63, 0.0  ;;  %v2988_v63 = vld [vmem:[%s4020_s5 + $0x8] sm:$0xff]  }
  0xdd   :  { %v2707_v60 = vpop.f32.mrf.mxu0  ;;  %2900 = vmatprep.subr.bf16.mxu0 %v2988_v63 }
  0xde   :  { %v440_v62 = vadd.f32 %v2707_v60, %v3462_v31  ;;  %2804 = vmatprep.mubr.msk.bf16.mxu1 %vm968_vm3, %v897_v58  ;;  %v803_v4 = vmax.f32 %v429_v61, 0.0  ;;  %2901 = vmatpush3.bf16.msra.mxu0 %v2988_v63 }
  0xdf   :  { %v431_v0 = vpop.f32.mrf.mxu0  ;;  %2805 = vmatmul.mubr.msk.bf16.gmra.mxu1 %vm968_vm3, %v898_v59 }
  0xe0   :  { %v432_v1 = vadd.f32 %v3462_v31, %v431_v0  ;;  %v806_v2 = vmax.f32 %v440_v62, 0.0 }
  0xe1   :  { %v2710_v3 = vpop.f32.mrf.mxu0 }
  0xe2   :  { %v804_v5 = vmax.f32 %v432_v1, 0.0  ;;  %v900_v9 = vpack.c.bf16 %v806_v2, %v805_v6  ;;  %v453_v13 = vadd.f32 %v2710_v3, %v3462_v31 }
  0xe3   :  { %v444_v7 = vpop.f32.mrf.mxu0 }
  0xe4   :  { %v899_v8 = vpack.c.bf16 %v804_v5, %v803_v4  ;;  %v445_v11 = vadd.f32 %v3462_v31, %v444_v7  ;;  %v809_v20 = vmax.f32 %v453_v13, 0.0 }
  0xe5   :  { %v2711_v10 = vpop.f32.mrf.mxu0 }
  0xe6   :  { %v456_v12 = vadd.f32 %v2711_v10, %v3462_v31  ;;  %2808 = vmatprep.mubr.msk.bf16.mxu1 %vm968_vm3, %v899_v8  ;;  %v807_v18 = vmax.f32 %v445_v11, 0.0 }
  0xe7   :  { %v447_v14 = vpop.f32.mrf.mxu0  ;;  %2809 = vmatmul.mubr.msk.bf16.gmra.mxu1 %vm968_vm3, %v900_v9 }
  0xe8   :  { %v448_v15 = vadd.f32 %v3462_v31, %v447_v14  ;;  %v810_v16 = vmax.f32 %v456_v12, 0.0 }
  0xe9   :  { %v2714_v17 = vpop.f32.mrf.mxu0 }
  0xea   :  { %v808_v19 = vmax.f32 %v448_v15, 0.0  ;;  %v902_v23 = vpack.c.bf16 %v810_v16, %v809_v20  ;;  %v469_v27 = vadd.f32 %v2714_v17, %v3462_v31 }
  0xeb   :  { %v460_v21 = vpop.f32.mrf.mxu0 }
  0xec   :  { %v901_v22 = vpack.c.bf16 %v808_v19, %v807_v18  ;;  %v461_v25 = vadd.f32 %v3462_v31, %v460_v21  ;;  %v813_v35 = vmax.f32 %v469_v27, 0.0 }
  0xed   :  { %v2715_v24 = vpop.f32.mrf.mxu0 }
  0xee   :  { %v472_v26 = vadd.f32 %v2715_v24, %v3462_v31  ;;  %2812 = vmatprep.mubr.msk.bf16.mxu1 %vm968_vm3, %v901_v22  ;;  %v811_v33 = vmax.f32 %v461_v25, 0.0 }
  0xef   :  { %v463_v28 = vpop.f32.mrf.mxu0  ;;  %2813 = vmatmul.mubr.msk.bf16.gmra.mxu1 %vm968_vm3, %v902_v23 }
  0xf0   :  { %v464_v29 = vadd.f32 %v3462_v31, %v463_v28  ;;  %v814_v30 = vmax.f32 %v472_v26, 0.0 }
  0xf1   :  { %v2718_v32 = vpop.f32.mrf.mxu0 }
  0xf2   :  { %v812_v34 = vmax.f32 %v464_v29, 0.0  ;;  %v904_v38 = vpack.c.bf16 %v814_v30, %v813_v35  ;;  %v485_v42 = vadd.f32 %v2718_v32, %v3462_v31 }
  0xf3   :  { %v476_v36 = vpop.f32.mrf.mxu0 }
  0xf4   :  { %v903_v37 = vpack.c.bf16 %v812_v34, %v811_v33  ;;  %v477_v40 = vadd.f32 %v3462_v31, %v476_v36  ;;  %v817_v49 = vmax.f32 %v485_v42, 0.0 }
  0xf5   :  { %v2719_v39 = vpop.f32.mrf.mxu0 }
  0xf6   :  { %v488_v41 = vadd.f32 %v2719_v39, %v3462_v31  ;;  %2816 = vmatprep.mubr.msk.bf16.mxu1 %vm968_vm3, %v903_v37  ;;  %v815_v47 = vmax.f32 %v477_v40, 0.0 }
  0xf7   :  { %v479_v43 = vpop.f32.mrf.mxu0  ;;  %2817 = vmatmul.mubr.msk.bf16.gmra.mxu1 %vm968_vm3, %v904_v38 }
  0xf8   :  { %v480_v44 = vadd.f32 %v3462_v31, %v479_v43  ;;  %v818_v45 = vmax.f32 %v488_v41, 0.0 }
  0xf9   :  { %v2722_v46 = vpop.f32.mrf.mxu0 }
  0xfa   :  { %v816_v48 = vmax.f32 %v480_v44, 0.0  ;;  %v906_v52 = vpack.c.bf16 %v818_v45, %v817_v49  ;;  %v501_v56 = vadd.f32 %v2722_v46, %v3462_v31 }
  0xfb   :  { %v492_v50 = vpop.f32.mrf.mxu0 }
  0xfc   :  { %v905_v51 = vpack.c.bf16 %v816_v48, %v815_v47  ;;  %v493_v54 = vadd.f32 %v3462_v31, %v492_v50  ;;  %v821_v0 = vmax.f32 %v501_v56, 0.0 }
  0xfd   :  { %v2723_v53 = vpop.f32.mrf.mxu0 }
  0xfe   :  { %v504_v55 = vadd.f32 %v2723_v53, %v3462_v31  ;;  %2820 = vmatprep.mubr.msk.bf16.mxu1 %vm968_vm3, %v905_v51  ;;  %v819_v61 = vmax.f32 %v493_v54, 0.0 }
  0xff   :  { %v495_v57 = vpop.f32.mrf.mxu0  ;;  %2821 = vmatmul.mubr.msk.bf16.gmra.mxu1 %vm968_vm3, %v906_v52 }
 0x100   :  { %v496_v58 = vadd.f32 %v3462_v31, %v495_v57  ;;  %v822_v59 = vmax.f32 %v504_v55, 0.0 }
 0x101   :  { %v2726_v60 = vpop.f32.mrf.mxu0 }
 0x102   :  { %v820_v62 = vmax.f32 %v496_v58, 0.0  ;;  %v908_v3 = vpack.c.bf16 %v822_v59, %v821_v0  ;;  %v517_v7 = vadd.f32 %v2726_v60, %v3462_v31 }
 0x103   :  { %v508_v1 = vpop.f32.mrf.mxu0 }
 0x104   :  { %v907_v2 = vpack.c.bf16 %v820_v62, %v819_v61  ;;  %v509_v5 = vadd.f32 %v3462_v31, %v508_v1  ;;  %v825_v14 = vmax.f32 %v517_v7, 0.0 }
 0x105   :  { %v2727_v4 = vpop.f32.mrf.mxu0 }
 0x106   :  { %v520_v6 = vadd.f32 %v2727_v4, %v3462_v31  ;;  %2824 = vmatprep.mubr.msk.bf16.mxu1 %vm968_vm3, %v907_v2  ;;  %v823_v12 = vmax.f32 %v509_v5, 0.0 }
 0x107   :  { %v511_v8 = vpop.f32.mrf.mxu0  ;;  %2825 = vmatmul.mubr.msk.bf16.gmra.mxu1 %vm968_vm3, %v908_v3 }
 0x108   :  { %v512_v9 = vadd.f32 %v3462_v31, %v511_v8  ;;  %v826_v10 = vmax.f32 %v520_v6, 0.0 }
 0x109   :  { %v2730_v11 = vpop.f32.mrf.mxu0 }
 0x10a   :  { %v824_v13 = vmax.f32 %v512_v9, 0.0  ;;  %v910_v17 = vpack.c.bf16 %v826_v10, %v825_v14  ;;  %v533_v21 = vadd.f32 %v2730_v11, %v3462_v31 }
 0x10b   :  { %v524_v15 = vpop.f32.mrf.mxu0 }
 0x10c   :  { %v909_v16 = vpack.c.bf16 %v824_v13, %v823_v12  ;;  %v525_v19 = vadd.f32 %v3462_v31, %v524_v15  ;;  %v829_v28 = vmax.f32 %v533_v21, 0.0 }
 0x10d   :  { %v2731_v18 = vpop.f32.mrf.mxu0 }
 0x10e   :  { %v536_v20 = vadd.f32 %v2731_v18, %v3462_v31  ;;  %2828 = vmatprep.mubr.msk.bf16.mxu1 %vm968_vm3, %v909_v16  ;;  %v827_v26 = vmax.f32 %v525_v19, 0.0 }
 0x10f   :  { %v527_v22 = vpop.f32.mrf.mxu0  ;;  %2829 = vmatmul.mubr.msk.bf16.gmra.mxu1 %vm968_vm3, %v910_v17 }
 0x110   :  { %v528_v23 = vadd.f32 %v3462_v31, %v527_v22  ;;  %v830_v24 = vmax.f32 %v536_v20, 0.0 }
 0x111   :  { %v2734_v25 = vpop.f32.mrf.mxu0 }
 0x112   :  { %v828_v27 = vmax.f32 %v528_v23, 0.0  ;;  %v912_v32 = vpack.c.bf16 %v830_v24, %v829_v28  ;;  %v549_v36 = vadd.f32 %v2734_v25, %v3462_v31 }
 0x113   :  { %v540_v29 = vpop.f32.mrf.mxu0 }
 0x114   :  { %v911_v30 = vpack.c.bf16 %v828_v27, %v827_v26  ;;  %v541_v34 = vadd.f32 %v3462_v31, %v540_v29  ;;  %v833_v43 = vmax.f32 %v549_v36, 0.0 }
 0x115   :  { %v2735_v33 = vpop.f32.mrf.mxu0 }
 0x116   :  { %v552_v35 = vadd.f32 %v2735_v33, %v3462_v31  ;;  %2832 = vmatprep.mubr.msk.bf16.mxu1 %vm968_vm3, %v911_v30  ;;  %v831_v41 = vmax.f32 %v541_v34, 0.0 }
 0x117   :  { %v543_v37 = vpop.f32.mrf.mxu0  ;;  %2833 = vmatmul.mubr.msk.bf16.gmra.mxu1 %vm968_vm3, %v912_v32 }
 0x118   :  { %v544_v38 = vadd.f32 %v3462_v31, %v543_v37  ;;  %v834_v39 = vmax.f32 %v552_v35, 0.0 }
 0x119   :  { %v2738_v40 = vpop.f32.mrf.mxu0 }
 0x11a   :  { %v832_v42 = vmax.f32 %v544_v38, 0.0  ;;  %v914_v46 = vpack.c.bf16 %v834_v39, %v833_v43  ;;  %v565_v50 = vadd.f32 %v2738_v40, %v3462_v31 }
 0x11b   :  { %v556_v44 = vpop.f32.mrf.mxu0 }
 0x11c   :  { %v913_v45 = vpack.c.bf16 %v832_v42, %v831_v41  ;;  %v557_v48 = vadd.f32 %v3462_v31, %v556_v44  ;;  %v837_v57 = vmax.f32 %v565_v50, 0.0 }
 0x11d   :  { %v2739_v47 = vpop.f32.mrf.mxu0 }
 0x11e   :  { %v568_v49 = vadd.f32 %v2739_v47, %v3462_v31  ;;  %2836 = vmatprep.mubr.msk.bf16.mxu1 %vm968_vm3, %v913_v45  ;;  %v835_v55 = vmax.f32 %v557_v48, 0.0 }
 0x11f   :  { %v559_v51 = vpop.f32.mrf.mxu0  ;;  %2837 = vmatmul.mubr.msk.bf16.gmra.mxu1 %vm968_vm3, %v914_v46 }
 0x120   :  { %v560_v52 = vadd.f32 %v3462_v31, %v559_v51  ;;  %v838_v53 = vmax.f32 %v568_v49, 0.0 }
 0x121   :  { %v2742_v54 = vpop.f32.mrf.mxu0 }
 0x122   :  { %v836_v56 = vmax.f32 %v560_v52, 0.0  ;;  %v916_v60 = vpack.c.bf16 %v838_v53, %v837_v57  ;;  %v581_v0 = vadd.f32 %v2742_v54, %v3462_v31 }
 0x123   :  { %v572_v58 = vpop.f32.mrf.mxu0 }
 0x124   :  { %v915_v59 = vpack.c.bf16 %v836_v56, %v835_v55  ;;  %v573_v62 = vadd.f32 %v3462_v31, %v572_v58  ;;  %v841_v7 = vmax.f32 %v581_v0, 0.0 }
 0x125   :  { %v2743_v61 = vpop.f32.mrf.mxu0 }
 0x126   :  { %v584_v63 = vadd.f32 %v2743_v61, %v3462_v31  ;;  %2840 = vmatprep.mubr.msk.bf16.mxu1 %vm968_vm3, %v915_v59  ;;  %v839_v5 = vmax.f32 %v573_v62, 0.0 }
 0x127   :  { %v575_v1 = vpop.f32.mrf.mxu0  ;;  %2841 = vmatmul.mubr.msk.bf16.gmra.mxu1 %vm968_vm3, %v916_v60 }
 0x128   :  { %v576_v2 = vadd.f32 %v3462_v31, %v575_v1  ;;  %v842_v3 = vmax.f32 %v584_v63, 0.0 }
 0x129   :  { %v2746_v4 = vpop.f32.mrf.mxu0 }
 0x12a   :  { %v840_v6 = vmax.f32 %v576_v2, 0.0  ;;  %v918_v10 = vpack.c.bf16 %v842_v3, %v841_v7  ;;  %v597_v14 = vadd.f32 %v2746_v4, %v3462_v31 }
 0x12b   :  { %v588_v8 = vpop.f32.mrf.mxu0 }
 0x12c   :  { %v917_v9 = vpack.c.bf16 %v840_v6, %v839_v5  ;;  %v589_v12 = vadd.f32 %v3462_v31, %v588_v8  ;;  %v845_v21 = vmax.f32 %v597_v14, 0.0 }
 0x12d   :  { %v2747_v11 = vpop.f32.mrf.mxu0 }
 0x12e   :  { %v600_v13 = vadd.f32 %v2747_v11, %v3462_v31  ;;  %2844 = vmatprep.mubr.msk.bf16.mxu1 %vm968_vm3, %v917_v9  ;;  %v843_v19 = vmax.f32 %v589_v12, 0.0 }
 0x12f   :  { %v591_v15 = vpop.f32.mrf.mxu0  ;;  %2845 = vmatmul.mubr.msk.bf16.gmra.mxu1 %vm968_vm3, %v918_v10 }
 0x130   :  { %v592_v16 = vadd.f32 %v3462_v31, %v591_v15  ;;  %v846_v17 = vmax.f32 %v600_v13, 0.0 }
 0x131   :  { %v2750_v18 = vpop.f32.mrf.mxu0 }
 0x132   :  { %v844_v20 = vmax.f32 %v592_v16, 0.0  ;;  %v920_v24 = vpack.c.bf16 %v846_v17, %v845_v21  ;;  %v613_v28 = vadd.f32 %v2750_v18, %v3462_v31 }
 0x133   :  { %v604_v22 = vpop.f32.mrf.mxu0 }
 0x134   :  { %v919_v23 = vpack.c.bf16 %v844_v20, %v843_v19  ;;  %v605_v26 = vadd.f32 %v3462_v31, %v604_v22  ;;  %v849_v36 = vmax.f32 %v613_v28, 0.0 }
 0x135   :  { %v2751_v25 = vpop.f32.mrf.mxu0 }
 0x136   :  { %v616_v27 = vadd.f32 %v2751_v25, %v3462_v31  ;;  %2848 = vmatprep.mubr.msk.bf16.mxu1 %vm968_vm3, %v919_v23  ;;  %v847_v34 = vmax.f32 %v605_v26, 0.0 }
 0x137   :  { %v607_v29 = vpop.f32.mrf.mxu0  ;;  %2849 = vmatmul.mubr.msk.bf16.gmra.mxu1 %vm968_vm3, %v920_v24 }
 0x138   :  { %v608_v30 = vadd.f32 %v3462_v31, %v607_v29  ;;  %v850_v32 = vmax.f32 %v616_v27, 0.0 }
 0x139   :  { %v2754_v33 = vpop.f32.mrf.mxu0 }
 0x13a   :  { %v848_v35 = vmax.f32 %v608_v30, 0.0  ;;  %v922_v39 = vpack.c.bf16 %v850_v32, %v849_v36  ;;  %v629_v43 = vadd.f32 %v2754_v33, %v3462_v31 }
 0x13b   :  { %v620_v37 = vpop.f32.mrf.mxu0 }
 0x13c   :  { %v921_v38 = vpack.c.bf16 %v848_v35, %v847_v34  ;;  %v621_v41 = vadd.f32 %v3462_v31, %v620_v37  ;;  %v853_v50 = vmax.f32 %v629_v43, 0.0 }
 0x13d   :  { %v2755_v40 = vpop.f32.mrf.mxu0 }
 0x13e   :  { %v632_v42 = vadd.f32 %v2755_v40, %v3462_v31  ;;  %2852 = vmatprep.mubr.msk.bf16.mxu1 %vm968_vm3, %v921_v38  ;;  %v851_v48 = vmax.f32 %v621_v41, 0.0 }
 0x13f   :  { %v623_v44 = vpop.f32.mrf.mxu0  ;;  %2853 = vmatmul.mubr.msk.bf16.gmra.mxu1 %vm968_vm3, %v922_v39 }
 0x140   :  { %v624_v45 = vadd.f32 %v3462_v31, %v623_v44  ;;  %v854_v46 = vmax.f32 %v632_v42, 0.0 }
 0x141   :  { %v2758_v47 = vpop.f32.mrf.mxu0 }
 0x142   :  { %v852_v49 = vmax.f32 %v624_v45, 0.0  ;;  %v924_v53 = vpack.c.bf16 %v854_v46, %v853_v50  ;;  %v645_v57 = vadd.f32 %v2758_v47, %v3462_v31  ;;  %v2989_v50 = vld [vmem:[%s4020_s5] sm:$0xff]  }
 0x143   :  { %v636_v51 = vpop.f32.mrf.mxu0  ;;  %2902 = vmatprep.subr.bf16.mxu0 %v2989_v50 }
 0x144   :  { %v923_v52 = vpack.c.bf16 %v852_v49, %v851_v48  ;;  %v637_v55 = vadd.f32 %v3462_v31, %v636_v51  ;;  %v857_v0 = vmax.f32 %v645_v57, 0.0  ;;  %2903 = vmatpush3.bf16.msra.mxu0 %v2989_v50 }
 0x145   :  { %v2759_v54 = vpop.f32.mrf.mxu0 }
 0x146   :  { %v648_v56 = vadd.f32 %v2759_v54, %v3462_v31  ;;  %2856 = vmatprep.mubr.msk.bf16.mxu1 %vm968_vm3, %v923_v52  ;;  %v855_v62 = vmax.f32 %v637_v55, 0.0 }
 0x147   :  { %v639_v58 = vpop.f32.mrf.mxu0  ;;  %2857 = vmatmul.mubr.msk.bf16.gmra.mxu1 %vm968_vm3, %v924_v53 }
 0x148   :  { %v640_v59 = vadd.f32 %v3462_v31, %v639_v58  ;;  %v858_v60 = vmax.f32 %v648_v56, 0.0 }
 0x149   :  { %v2762_v61 = vpop.f32.mrf.mxu0 }
 0x14a   :  { %v856_v63 = vmax.f32 %v640_v59, 0.0  ;;  %v926_v3 = vpack.c.bf16 %v858_v60, %v857_v0  ;;  %v661_v7 = vadd.f32 %v2762_v61, %v3462_v31 }
 0x14b   :  { %v652_v1 = vpop.f32.mrf.mxu0 }
 0x14c   :  { %v925_v2 = vpack.c.bf16 %v856_v63, %v855_v62  ;;  %v653_v5 = vadd.f32 %v3462_v31, %v652_v1  ;;  %v861_v14 = vmax.f32 %v661_v7, 0.0 }
 0x14d   :  { %v2763_v4 = vpop.f32.mrf.mxu0 }
 0x14e   :  { %v664_v6 = vadd.f32 %v2763_v4, %v3462_v31  ;;  %2860 = vmatprep.mubr.msk.bf16.mxu1 %vm968_vm3, %v925_v2  ;;  %v859_v12 = vmax.f32 %v653_v5, 0.0 }
 0x14f   :  { %v655_v8 = vpop.f32.mrf.mxu0  ;;  %2861 = vmatmul.mubr.msk.bf16.gmra.mxu1 %vm968_vm3, %v926_v3 }
 0x150   :  { %v656_v9 = vadd.f32 %v3462_v31, %v655_v8  ;;  %v862_v10 = vmax.f32 %v664_v6, 0.0 }
 0x151   :  { %v2766_v11 = vpop.f32.mrf.mxu0 }
 0x152   :  { %v860_v13 = vmax.f32 %v656_v9, 0.0  ;;  %v928_v17 = vpack.c.bf16 %v862_v10, %v861_v14  ;;  %v677_v21 = vadd.f32 %v2766_v11, %v3462_v31 }
 0x153   :  { %v668_v15 = vpop.f32.mrf.mxu0 }
 0x154   :  { %v927_v16 = vpack.c.bf16 %v860_v13, %v859_v12  ;;  %v669_v19 = vadd.f32 %v3462_v31, %v668_v15  ;;  %v865_v28 = vmax.f32 %v677_v21, 0.0 }
 0x155   :  { %v2767_v18 = vpop.f32.mrf.mxu0 }
 0x156   :  { %v680_v20 = vadd.f32 %v2767_v18, %v3462_v31  ;;  %2864 = vmatprep.mubr.msk.bf16.mxu1 %vm968_vm3, %v927_v16  ;;  %v863_v26 = vmax.f32 %v669_v19, 0.0 }
 0x157   :  { %v671_v22 = vpop.f32.mrf.mxu0  ;;  %2865 = vmatmul.mubr.msk.bf16.gmra.mxu1 %vm968_vm3, %v928_v17 }
 0x158   :  { %v672_v23 = vadd.f32 %v3462_v31, %v671_v22  ;;  %v866_v24 = vmax.f32 %v680_v20, 0.0 }
 0x159   :  { %v2770_v25 = vpop.f32.mrf.mxu0 }
 0x15a   :  { %v864_v27 = vmax.f32 %v672_v23, 0.0  ;;  %v930_v32 = vpack.c.bf16 %v866_v24, %v865_v28  ;;  %v693_v36 = vadd.f32 %v2770_v25, %v3462_v31 }
 0x15b   :  { %v684_v29 = vpop.f32.mrf.mxu0 }
 0x15c   :  { %v929_v30 = vpack.c.bf16 %v864_v27, %v863_v26  ;;  %v685_v34 = vadd.f32 %v3462_v31, %v684_v29  ;;  %v869_v43 = vmax.f32 %v693_v36, 0.0 }
 0x15d   :  { %v2771_v33 = vpop.f32.mrf.mxu0 }
 0x15e   :  { %v696_v35 = vadd.f32 %v2771_v33, %v3462_v31  ;;  %2868 = vmatprep.mubr.msk.bf16.mxu1 %vm968_vm3, %v929_v30  ;;  %v867_v41 = vmax.f32 %v685_v34, 0.0 }
 0x15f   :  { %v687_v37 = vpop.f32.mrf.mxu0  ;;  %2869 = vmatmul.mubr.msk.bf16.gmra.mxu1 %vm968_vm3, %v930_v32 }
 0x160   :  { %v688_v38 = vadd.f32 %v3462_v31, %v687_v37  ;;  %v870_v39 = vmax.f32 %v696_v35, 0.0 }
 0x161   :  { %v2774_v40 = vpop.f32.mrf.mxu0 }
 0x162   :  { %v868_v42 = vmax.f32 %v688_v38, 0.0  ;;  %v932_v46 = vpack.c.bf16 %v870_v39, %v869_v43  ;;  %v709_v51 = vadd.f32 %v2774_v40, %v3462_v31 }
 0x163   :  { %v700_v44 = vpop.f32.mrf.mxu0 }
 0x164   :  { %v931_v45 = vpack.c.bf16 %v868_v42, %v867_v41  ;;  %v701_v48 = vadd.f32 %v3462_v31, %v700_v44  ;;  %v873_v58 = vmax.f32 %v709_v51, 0.0 }
 0x165   :  { %v2775_v47 = vpop.f32.mrf.mxu0 }
 0x166   :  { %v712_v49 = vadd.f32 %v2775_v47, %v3462_v31  ;;  %2872 = vmatprep.mubr.msk.bf16.mxu1 %vm968_vm3, %v931_v45  ;;  %v871_v56 = vmax.f32 %v701_v48, 0.0 }
 0x167   :  { %v703_v52 = vpop.f32.mrf.mxu0  ;;  %2873 = vmatmul.mubr.msk.bf16.gmra.mxu1 %vm968_vm3, %v932_v46 }
 0x168   :  { %v704_v53 = vadd.f32 %v3462_v31, %v703_v52  ;;  %v874_v54 = vmax.f32 %v712_v49, 0.0 }
 0x169   :  { %v2778_v55 = vpop.f32.mrf.mxu0 }
 0x16a   :  { %v872_v57 = vmax.f32 %v704_v53, 0.0  ;;  %v934_v61 = vpack.c.bf16 %v874_v54, %v873_v58  ;;  %v725_v1 = vadd.f32 %v2778_v55, %v3462_v31 }
 0x16b   :  { %v716_v59 = vpop.f32.mrf.mxu0 }
 0x16c   :  { %v933_v60 = vpack.c.bf16 %v872_v57, %v871_v56  ;;  %v717_v63 = vadd.f32 %v3462_v31, %v716_v59  ;;  %v877_v8 = vmax.f32 %v725_v1, 0.0 }
 0x16d   :  { %v2779_v62 = vpop.f32.mrf.mxu0 }
 0x16e   :  { %v728_v0 = vadd.f32 %v2779_v62, %v3462_v31  ;;  %2876 = vmatprep.mubr.msk.bf16.mxu1 %vm968_vm3, %v933_v60  ;;  %v875_v6 = vmax.f32 %v717_v63, 0.0 }
 0x16f   :  { %v719_v2 = vpop.f32.mrf.mxu0  ;;  %2877 = vmatmul.mubr.msk.bf16.gmra.mxu1 %vm968_vm3, %v934_v61 }
 0x170   :  { %v720_v3 = vadd.f32 %v3462_v31, %v719_v2  ;;  %v878_v4 = vmax.f32 %v728_v0, 0.0 }
 0x171   :  { %v2782_v5 = vpop.f32.mrf.mxu0 }
 0x172   :  { %v876_v7 = vmax.f32 %v720_v3, 0.0  ;;  %v936_v11 = vpack.c.bf16 %v878_v4, %v877_v8  ;;  %v741_v15 = vadd.f32 %v2782_v5, %v3462_v31 }
 0x173   :  { %v732_v9 = vpop.f32.mrf.mxu0 }
 0x174   :  { %v935_v10 = vpack.c.bf16 %v876_v7, %v875_v6  ;;  %v733_v13 = vadd.f32 %v3462_v31, %v732_v9  ;;  %v881_v22 = vmax.f32 %v741_v15, 0.0 }
 0x175   :  { %v2783_v12 = vpop.f32.mrf.mxu0 }
 0x176   :  { %v744_v14 = vadd.f32 %v2783_v12, %v3462_v31  ;;  %2880 = vmatprep.mubr.msk.bf16.mxu1 %vm968_vm3, %v935_v10  ;;  %v879_v20 = vmax.f32 %v733_v13, 0.0 }
 0x177   :  { %v735_v16 = vpop.f32.mrf.mxu0  ;;  %2881 = vmatmul.mubr.msk.bf16.gmra.mxu1 %vm968_vm3, %v936_v11 }
 0x178   :  { %v736_v17 = vadd.f32 %v3462_v31, %v735_v16  ;;  %v882_v18 = vmax.f32 %v744_v14, 0.0 }
 0x179   :  { %v2786_v19 = vpop.f32.mrf.mxu0 }
 0x17a   :  { %v880_v21 = vmax.f32 %v736_v17, 0.0  ;;  %v938_v25 = vpack.c.bf16 %v882_v18, %v881_v22  ;;  %v757_v29 = vadd.f32 %v2786_v19, %v3462_v31 }
 0x17b   :  { %v748_v23 = vpop.f32.mrf.mxu0 }
 0x17c   :  { %v937_v24 = vpack.c.bf16 %v880_v21, %v879_v20  ;;  %v749_v27 = vadd.f32 %v3462_v31, %v748_v23  ;;  %v885_v37 = vmax.f32 %v757_v29, 0.0  ;;  %v3641_v20 = vld [vmem:[%s4019_s4] ss:$0 sm:$0xff] }
 0x17d   :  { %v2787_v26 = vpop.f32.mrf.mxu0 }
 0x17e   :  { %v760_v28 = vadd.f32 %v2787_v26, %v3462_v31  ;;  %2884 = vmatprep.mubr.msk.bf16.mxu1 %vm968_vm3, %v937_v24  ;;  %v883_v35 = vmax.f32 %v749_v27, 0.0 }
 0x17f   :  { %v751_v30 = vpop.f32.mrf.mxu0  ;;  %2885 = vmatmul.mubr.msk.bf16.gmra.mxu1 %vm968_vm3, %v938_v25 }
 0x180   :  { %v752_v32 = vadd.f32 %v3462_v31, %v751_v30  ;;  %v886_v33 = vmax.f32 %v760_v28, 0.0 }
 0x181   :  { %v2790_v34 = vpop.f32.mrf.mxu0 }
 0x182   :  { %v884_v36 = vmax.f32 %v752_v32, 0.0  ;;  %v940_v40 = vpack.c.bf16 %v886_v33, %v885_v37  ;;  %v773_v44 = vadd.f32 %v2790_v34, %v3462_v31 }
 0x183   :  { %v764_v38 = vpop.f32.mrf.mxu0 }
 0x184   :  { %v939_v39 = vpack.c.bf16 %v884_v36, %v883_v35  ;;  %v765_v42 = vadd.f32 %v3462_v31, %v764_v38  ;;  %v889_v51 = vmax.f32 %v773_v44, 0.0 }
 0x185   :  { %v2791_v41 = vpop.f32.mrf.mxu0 }
 0x186   :  { %v776_v43 = vadd.f32 %v2791_v41, %v3462_v31  ;;  %2888 = vmatprep.mubr.msk.bf16.mxu1 %vm968_vm3, %v939_v39  ;;  %v887_v49 = vmax.f32 %v765_v42, 0.0 }
 0x187   :  { %v767_v45 = vpop.f32.mrf.mxu0  ;;  %2889 = vmatmul.mubr.msk.bf16.gmra.mxu1 %vm968_vm3, %v940_v40 }
 0x188   :  { %v768_v46 = vadd.f32 %v3462_v31, %v767_v45  ;;  %v890_v47 = vmax.f32 %v776_v43, 0.0 }
 0x189   :  { %v2794_v48 = vpop.f32.mrf.mxu0 }
 0x18a   :  { %v888_v50 = vmax.f32 %v768_v46, 0.0  ;;  %v942_v54 = vpack.c.bf16 %v890_v47, %v889_v51  ;;  %v789_v58 = vadd.f32 %v2794_v48, %v3462_v31 }
 0x18b   :  { %v780_v52 = vpop.f32.mrf.mxu0 }
 0x18c   :  { %v941_v53 = vpack.c.bf16 %v888_v50, %v887_v49  ;;  %v781_v56 = vadd.f32 %v3462_v31, %v780_v52  ;;  %v893_v0 = vmax.f32 %v789_v58, 0.0 }
 0x18d   :  { %v2795_v55 = vpop.f32.mrf.mxu0 }
 0x18e   :  { %v792_v57 = vadd.f32 %v2795_v55, %v3462_v31  ;;  %2892 = vmatprep.mubr.msk.bf16.mxu1 %vm968_vm3, %v941_v53  ;;  %v891_v62 = vmax.f32 %v781_v56, 0.0 }
 0x18f   :  { %v783_v59 = vpop.f32.mrf.mxu0  ;;  %2893 = vmatmul.mubr.msk.bf16.gmra.mxu1 %vm968_vm3, %v942_v54 }
 0x190   :  { %v784_v60 = vadd.f32 %v3462_v31, %v783_v59  ;;  %v894_v61 = vmax.f32 %v792_v57, 0.0 }
 0x192   :  { %v892_v63 = vmax.f32 %v784_v60, 0.0  ;;  %v944_v2 = vpack.c.bf16 %v894_v61, %v893_v0 }
 0x194   :  { %v943_v1 = vpack.c.bf16 %v892_v63, %v891_v62 }
 0x196   :  { %2896 = vmatprep.mubr.msk.bf16.mxu1 %vm968_vm3, %v943_v1 }
 0x197   :  { %v2802_v3 = vpop.f32.mrf.mxu1  ;;  %2897 = vmatmul.mubr.msk.bf16.gmra.mxu1 %vm968_vm3, %v944_v2 }
 0x198   :  { %v1162_v23 = vadd.f32 %v2802_v3, %v3641_v20 }
 0x199   :  { %v1153_v4 = vpop.f32.mrf.mxu1 }
 0x19a   :  { %v1154_v25 = vadd.f32 %v3641_v20, %v1153_v4  ;;  %v1554_v28 = vmax.f32 %v1162_v23, 0.0 }
 0x19b   :  { %v2803_v5 = vpop.f32.mrf.mxu1 }
 0x19c   :  { %v1165_v29 = vadd.f32 %v2803_v5, %v3641_v20  ;;  %v1552_v34 = vmax.f32 %v1154_v25, 0.0 }
 0x19d   :  { %v3620_v6 = vpop.f32.mrf.mxu1 }
 0x19e   :  { %v1555_v39 = vmax.f32 %v1165_v29, 0.0 }
 0x19f   :  { %v2806_v7 = vpop.f32.mrf.mxu1 }
 0x1a0   :  { %v1178_v40 = vadd.f32 %v2806_v7, %v3641_v20 }
 0x1a1   :  { %v1169_v8 = vpop.f32.mrf.mxu1 }
 0x1a2   :  { %v1170_v44 = vadd.f32 %v3641_v20, %v1169_v8  ;;  %v1558_v48 = vmax.f32 %v1178_v40, 0.0  ;;  %v2990_v8 = vld [vmem:[%s4022_s7 + $0x18] sm:$0xff]  }
 0x1a3   :  { %v2807_v9 = vpop.f32.mrf.mxu1  ;;  %2924 = vmatprep.subr.bf16.mxu1 %v2990_v8 }
 0x1a4   :  { %v1181_v49 = vadd.f32 %v2807_v9, %v3641_v20  ;;  %v1556_v53 = vmax.f32 %v1170_v44, 0.0  ;;  %2925 = vmatpush3.bf16.msra.mxu1 %v2990_v8 }
 0x1a5   :  { %v3622_v10 = vpop.f32.mrf.mxu1 }
 0x1a6   :  { %v1559_v58 = vmax.f32 %v1181_v49, 0.0 }
 0x1a7   :  { %v2810_v31 = vpop.f32.mrf.mxu1 }
 0x1a8   :  { %v1194_v59 = vadd.f32 %v2810_v31, %v3641_v20 }
 0x1a9   :  { %v1185_v11 = vpop.f32.mrf.mxu1 }
 0x1aa   :  { %v1186_v63 = vadd.f32 %v3641_v20, %v1185_v11  ;;  %v1562_v3 = vmax.f32 %v1194_v59, 0.0 }
 0x1ab   :  { %v2811_v12 = vpop.f32.mrf.mxu1 }
 0x1ac   :  { %v1197_v4 = vadd.f32 %v2811_v12, %v3641_v20  ;;  %v1560_v31 = vmax.f32 %v1186_v63, 0.0 }
 0x1ad   :  { %v3624_v13 = vpop.f32.mrf.mxu1 }
 0x1af   :  { %v3626_v14 = vpop.f32.mrf.mxu1 }
 0x1b0   :  { %v1210_v12 = vadd.f32 %v3626_v14, %v3641_v20 }
 0x1b1   :  { %v3628_v15 = vpop.f32.mrf.mxu1 }
 0x1b3   :  { %v3630_v16 = vpop.f32.mrf.mxu1 }
 0x1b5   :  { %v3632_v17 = vpop.f32.mrf.mxu1 }
 0x1b6   :  { %v1205_v14 = vadd.f32 %v3641_v20, %v3632_v17 }
 0x1b7   :  { %v3634_v18 = vpop.f32.mrf.mxu1 }
 0x1b9   :  { %v3636_v19 = vpop.f32.mrf.mxu1 }
 0x1ba   :  { %v1218_v17 = vadd.f32 %v3641_v20, %v3636_v19 }
 0x1bb   :  { %v3643_v21 = vpop.f32.mrf.mxu1 }
 0x1bc   :  { %v1568_v19 = vmax.f32 %v1218_v17, 0.0 }
 0x1bd   :  { %v3645_v22 = vpop.f32.mrf.mxu1 }
 0x1bf   :  { %v2822_v24 = vpop.f32.mrf.mxu1 }
 0x1c0   :  { %v1242_v26 = vadd.f32 %v2822_v24, %v3641_v20 }
 0x1c1   :  { %v1233_v27 = vpop.f32.mrf.mxu1 }
 0x1c2   :  { %v1574_v30 = vmax.f32 %v1242_v26, 0.0  ;;  %v1234_v32 = vadd.f32 %v3641_v20, %v1233_v27  ;;  %v1563_v26 = vmax.f32 %v1197_v4, 0.0 }
 0x1c3   :  { %v2823_v33 = vpop.f32.mrf.mxu1 }
 0x1c4   :  { %v3652_v35 = vmax.f32 %v1554_v28, %v1574_v30  ;;  %v1572_v36 = vmax.f32 %v1234_v32, 0.0  ;;  %v1245_v37 = vadd.f32 %v2823_v33, %v3641_v20  ;;  %v1202_v30 = vadd.f32 %v3641_v20, %v3628_v15 }
 0x1c5   :  { %v3655_v38 = vpop.f32.mrf.mxu1 }
 0x1c6   :  { %v3658_v41 = vmax.f32 %v1552_v34, %v1572_v36  ;;  %v1575_v42 = vmax.f32 %v1245_v37, 0.0  ;;  %v1566_v36 = vmax.f32 %v1210_v12, 0.0  ;;  %v1213_v37 = vadd.f32 %v3630_v16, %v3641_v20  ;;  %v2992_v12 = vld [vmem:[%s4022_s7 + $0x8] sm:$0xff]  }
 0x1c7   :  { %v2826_v43 = vpop.f32.mrf.mxu1 }
 0x1c8   :  { %v3661_v45 = vmax.f32 %v1555_v39, %v1575_v42  ;;  %v1258_v46 = vadd.f32 %v2826_v43, %v3641_v20  ;;  %v1564_v43 = vmax.f32 %v1202_v30, 0.0  ;;  %v1567_v49 = vmax.f32 %v1213_v37, 0.0 }
 0x1c9   :  { %v1249_v47 = vpop.f32.mrf.mxu1 }
 0x1ca   :  { %v1578_v50 = vmax.f32 %v1258_v46, 0.0  ;;  %v1250_v51 = vadd.f32 %v3641_v20, %v1249_v47  ;;  %v1226_v47 = vadd.f32 %v3634_v18, %v3641_v20  ;;  %v1229_v18 = vadd.f32 %v3643_v21, %v3641_v20 }
 0x1cb   :  { %v2827_v52 = vpop.f32.mrf.mxu1 }
 0x1cc   :  { %v3666_v54 = vmax.f32 %v1558_v48, %v1578_v50  ;;  %v1576_v55 = vmax.f32 %v1250_v51, 0.0  ;;  %v1261_v56 = vadd.f32 %v2827_v52, %v3641_v20  ;;  %v1565_v52 = vmax.f32 %v1205_v14, 0.0 }
 0x1cd   :  { %v3669_v57 = vpop.f32.mrf.mxu1  ;;  %v1570_v59 = vmax.f32 %v1226_v47, 0.0 }
 0x1ce   :  { %v3672_v60 = vmax.f32 %v1556_v53, %v1576_v55  ;;  %v1579_v61 = vmax.f32 %v1261_v56, 0.0 }
 0x1cf   :  { %v2830_v62 = vpop.f32.mrf.mxu1 }
 0x1d0   :  { %v3675_v0 = vmax.f32 %v1559_v58, %v1579_v61  ;;  %v1274_v1 = vadd.f32 %v2830_v62, %v3641_v20 }
 0x1d1   :  { %v1265_v2 = vpop.f32.mrf.mxu1 }
 0x1d2   :  { %v1582_v5 = vmax.f32 %v1274_v1, 0.0  ;;  %v1266_v7 = vadd.f32 %v3641_v20, %v1265_v2  ;;  %v1221_v2 = vadd.f32 %v3641_v20, %v3645_v22  ;;  %v2991_v22 = vld [vmem:[%s4022_s7 + $0x10] sm:$0xff]  }
 0x1d3   :  { %v2831_v9 = vpop.f32.mrf.mxu1  ;;  %2926 = vmatprep.subr.bf16.mxu1 %v2991_v22 }
 0x1d4   :  { %v3683_v23 = vmax.f32 %v1562_v3, %v1582_v5  ;;  %v1580_v11 = vmax.f32 %v1266_v7, 0.0  ;;  %v1277_v24 = vadd.f32 %v2831_v9, %v3641_v20  ;;  %v1571_v9 = vmax.f32 %v1229_v18, 0.0  ;;  %2927 = vmatpush3.bf16.msra.mxu1 %v2991_v22 }
 0x1d5   :  { %v3686_v25 = vpop.f32.mrf.mxu1  ;;  %2928 = vmatprep.subr.bf16.mxu1 %v2992_v12  ;;  %v1189_v22 = vadd.f32 %v3641_v20, %v3624_v13 }
 0x1d6   :  { %v3690_v27 = vmax.f32 %v1560_v31, %v1580_v11  ;;  %v1583_v28 = vmax.f32 %v1277_v24, 0.0  ;;  %v1569_v24 = vmax.f32 %v1221_v2, 0.0 }
 0x1d7   :  { %v2834_v29 = vpop.f32.mrf.mxu1 }
 0x1d8   :  { %v3694_v32 = vmax.f32 %v1563_v26, %v1583_v28  ;;  %v1290_v33 = vadd.f32 %v2834_v29, %v3641_v20  ;;  %v1237_v28 = vadd.f32 %v3641_v20, %v3655_v38  ;;  %v2993_v38 = vld [vmem:[%s4022_s7] sm:$0xff]   ;;  %2929 = vmatpush3.bf16.msra.mxu1 %v2992_v12 }
 0x1d9   :  { %v1281_v34 = vpop.f32.mrf.mxu1  ;;  %2930 = vmatprep.subr.bf16.mxu1 %v2993_v38 }
 0x1da   :  { %v1586_v39 = vmax.f32 %v1290_v33, 0.0  ;;  %v1282_v40 = vadd.f32 %v3641_v20, %v1281_v34 }
 0x1db   :  { %v2835_v42 = vpop.f32.mrf.mxu1 }
 0x1dc   :  { %v3702_v44 = vmax.f32 %v1566_v36, %v1586_v39  ;;  %v1584_v15 = vmax.f32 %v1282_v40, 0.0  ;;  %v1293_v46 = vadd.f32 %v2835_v42, %v3641_v20  ;;  %v1157_v36 = vadd.f32 %v3641_v20, %v3620_v6  ;;  %2931 = vmatpush3.bf16.msra.mxu1 %v2993_v38 }
 0x1dd   :  { %v1284_v48 = vpop.f32.mrf.mxu1  ;;  %v1573_v42 = vmax.f32 %v1237_v28, 0.0 }
 0x1de   :  { %v3707_v50 = vmax.f32 %v1564_v43, %v1584_v15  ;;  %v1587_v16 = vmax.f32 %v1293_v46, 0.0  ;;  %v1285_v51 = vadd.f32 %v3641_v20, %v1284_v48  ;;  %v1553_v47 = vmax.f32 %v1157_v36, 0.0 }
 0x1df   :  { %v2838_v53 = vpop.f32.mrf.mxu1 }
 0x1e0   :  { %v3712_v55 = vmax.f32 %v1567_v49, %v1587_v16  ;;  %v1585_v56 = vmax.f32 %v1285_v51, 0.0  ;;  %v1306_v58 = vadd.f32 %v2838_v53, %v3641_v20  ;;  %v1253_v51 = vadd.f32 %v3641_v20, %v3669_v57 }
 0x1e1   :  { %v1297_v61 = vpop.f32.mrf.mxu1  ;;  %v1653_v53 = vmax.f32 %v1553_v47, %v1573_v42 }
 0x1e2   :  { %v3717_v62 = vmax.f32 %v1565_v52, %v1585_v56  ;;  %v1590_v63 = vmax.f32 %v1306_v58, 0.0  ;;  %v1298_v1 = vadd.f32 %v3641_v20, %v1297_v61  ;;  %v1577_v57 = vmax.f32 %v1253_v51, 0.0 }
 0x1e3   :  { %v2839_v3 = vpop.f32.mrf.mxu1 }
 0x1e4   :  { %v3722_v4 = vmax.f32 %v1570_v59, %v1590_v63  ;;  %v1588_v5 = vmax.f32 %v1298_v1, 0.0  ;;  %v1309_v7 = vadd.f32 %v2839_v3, %v3641_v20 }
 0x1e5   :  { %v1300_v8 = vpop.f32.mrf.mxu1 }
 0x1e6   :  { %v3725_v31 = vmax.f32 %v1568_v19, %v1588_v5  ;;  %v1591_v21 = vmax.f32 %v1309_v7, 0.0  ;;  %v1301_v11 = vadd.f32 %v3641_v20, %v1300_v8 }
 0x1e7   :  { %v2842_v26 = vpop.f32.mrf.mxu1 }
 0x1e8   :  { %v3736_v29 = vmax.f32 %v1571_v9, %v1591_v21  ;;  %v1589_v30 = vmax.f32 %v1301_v11, 0.0  ;;  %v1322_v33 = vadd.f32 %v2842_v26, %v3641_v20  ;;  %v1269_v21 = vadd.f32 %v3641_v20, %v3686_v25 }
 0x1e9   :  { %v1313_v34 = vpop.f32.mrf.mxu1 }
 0x1ea   :  { %v3741_v37 = vmax.f32 %v1569_v24, %v1589_v30  ;;  %v1594_v39 = vmax.f32 %v1322_v33, 0.0  ;;  %v1314_v40 = vadd.f32 %v3641_v20, %v1313_v34  ;;  %v1581_v33 = vmax.f32 %v1269_v21, 0.0 }
 0x1eb   :  { %v2843_v14 = vpop.f32.mrf.mxu1 }
 0x1ec   :  { %v3748_v43 = vmax.f32 %v3652_v35, %v1594_v39  ;;  %v1592_v15 = vmax.f32 %v1314_v40, 0.0  ;;  %v1325_v46 = vadd.f32 %v2843_v14, %v3641_v20  ;;  %v1561_v39 = vmax.f32 %v1189_v22, 0.0 }
 0x1ed   :  { %v1316_v6 = vpop.f32.mrf.mxu1 }
 0x1ee   :  { %v3752_v48 = vmax.f32 %v3658_v41, %v1592_v15  ;;  %v1595_v49 = vmax.f32 %v1325_v46, 0.0  ;;  %v1317_v16 = vadd.f32 %v3641_v20, %v1316_v6  ;;  %v1173_v41 = vadd.f32 %v3641_v20, %v3622_v10 }
 0x1ef   :  { %v2846_v52 = vpop.f32.mrf.mxu1  ;;  %v1661_v42 = vmax.f32 %v1561_v39, %v1581_v33 }
 0x1f0   :  { %v3758_v35 = vmax.f32 %v3661_v45, %v1595_v49  ;;  %v1593_v17 = vmax.f32 %v1317_v16, 0.0  ;;  %v1338_v56 = vadd.f32 %v2846_v52, %v3641_v20  ;;  %v1557_v3 = vmax.f32 %v1173_v41, 0.0 }
 0x1f1   :  { %v1329_v58 = vpop.f32.mrf.mxu1 }
 0x1f2   :  { %v3763_v59 = vmax.f32 %v1653_v53, %v1593_v17  ;;  %v1598_v61 = vmax.f32 %v1338_v56, 0.0  ;;  %v1330_v18 = vadd.f32 %v3641_v20, %v1329_v58  ;;  %v1657_v8 = vmax.f32 %v1557_v3, %v1577_v57 }
 0x1f3   :  { %v2847_v63 = vpop.f32.mrf.mxu1 }
 0x1f4   :  { %v3767_v1 = vmax.f32 %v3666_v54, %v1598_v61  ;;  %v1596_v45 = vmax.f32 %v1330_v18, 0.0  ;;  %v1341_v2 = vadd.f32 %v2847_v63, %v3641_v20 }
 0x1f5   :  { %v1332_v19 = vpop.f32.mrf.mxu1 }
 0x1f6   :  { %v3771_v5 = vmax.f32 %v3672_v60, %v1596_v45  ;;  %v1599_v10 = vmax.f32 %v1341_v2, 0.0  ;;  %v1333_v7 = vadd.f32 %v3641_v20, %v1332_v19 }
 0x1f7   :  { %v2850_v9 = vpop.f32.mrf.mxu1 }
 0x1f8   :  { %v3777_v11 = vmax.f32 %v3675_v0, %v1599_v10  ;;  %v1597_v54 = vmax.f32 %v1333_v7, 0.0  ;;  %v1354_v24 = vadd.f32 %v2850_v9, %v3641_v20 }
 0x1f9   :  { %v1345_v26 = vpop.f32.mrf.mxu1 }
 0x1fa   :  { %v3782_v60 = vmax.f32 %v1657_v8, %v1597_v54  ;;  %v1602_v12 = vmax.f32 %v1354_v24, 0.0  ;;  %v1346_v28 = vadd.f32 %v3641_v20, %v1345_v26 }
 0x1fb   :  { %v2851_v30 = vpop.f32.mrf.mxu1 }
 0x1fc   :  { %v3786_v34 = vmax.f32 %v3683_v23, %v1602_v12  ;;  %v1600_v25 = vmax.f32 %v1346_v28, 0.0  ;;  %v1357_v0 = vadd.f32 %v2851_v30, %v3641_v20 }
 0x1fd   :  { %v1348_v36 = vpop.f32.mrf.mxu1 }
 0x1fe   :  { %v3790_v40 = vmax.f32 %v3690_v27, %v1600_v25  ;;  %v1603_v14 = vmax.f32 %v1357_v0, 0.0  ;;  %v1349_v13 = vadd.f32 %v3641_v20, %v1348_v36 }
 0x1ff   :  { %v2854_v38 = vpop.f32.mrf.mxu1 }
 0x200   :  { %v3794_v15 = vmax.f32 %v3694_v32, %v1603_v14  ;;  %v1601_v46 = vmax.f32 %v1349_v13, 0.0  ;;  %v1370_v23 = vadd.f32 %v2854_v38, %v3641_v20 }
 0x201   :  { %v1361_v6 = vpop.f32.mrf.mxu1 }
 0x202   :  { %v3797_v47 = vmax.f32 %v1661_v42, %v1601_v46  ;;  %v1606_v49 = vmax.f32 %v1370_v23, 0.0  ;;  %v1362_v16 = vadd.f32 %v3641_v20, %v1361_v6 }
 0x203   :  { %v2855_v51 = vpop.f32.mrf.mxu1 }
 0x204   :  { %v3801_v27 = vmax.f32 %v3702_v44, %v1606_v49  ;;  %v1604_v52 = vmax.f32 %v1362_v16, 0.0  ;;  %v1373_v53 = vadd.f32 %v2855_v51, %v3641_v20 }
 0x205   :  { %v1364_v17 = vpop.f32.mrf.mxu1 }
 0x206   :  { %v3805_v32 = vmax.f32 %v3707_v50, %v1604_v52  ;;  %v1607_v56 = vmax.f32 %v1373_v53, 0.0  ;;  %v1365_v41 = vadd.f32 %v3641_v20, %v1364_v17 }
 0x207   :  { %v2858_v58 = vpop.f32.mrf.mxu1 }
 0x208   :  { %v3809_v61 = vmax.f32 %v3712_v55, %v1607_v56  ;;  %v1605_v18 = vmax.f32 %v1365_v41, 0.0  ;;  %v1386_v57 = vadd.f32 %v2858_v58, %v3641_v20 }
 0x209   :  { %v1377_v63 = vpop.f32.mrf.mxu1 }
 0x20a   :  { %v3813_v44 = vmax.f32 %v3717_v62, %v1605_v18  ;;  %v1610_v45 = vmax.f32 %v1386_v57, 0.0  ;;  %v1378_v2 = vadd.f32 %v3641_v20, %v1377_v63 }
 0x20b   :  { %v2859_v3 = vpop.f32.mrf.mxu1 }
 0x20c   :  { %v3817_v50 = vmax.f32 %v3722_v4, %v1610_v45  ;;  %v1608_v19 = vmax.f32 %v1378_v2, 0.0  ;;  %v1389_v10 = vadd.f32 %v2859_v3, %v3641_v20 }
 0x20d   :  { %v1380_v7 = vpop.f32.mrf.mxu1 }
 0x20e   :  { %v3821_v55 = vmax.f32 %v3725_v31, %v1608_v19  ;;  %v1611_v8 = vmax.f32 %v1389_v10, 0.0  ;;  %v1381_v9 = vadd.f32 %v3641_v20, %v1380_v7 }
 0x20f   :  { %v2862_v21 = vpop.f32.mrf.mxu1 }
 0x210   :  { %v3825_v62 = vmax.f32 %v3736_v29, %v1611_v8  ;;  %v1609_v54 = vmax.f32 %v1381_v9, 0.0  ;;  %v1402_v46 = vadd.f32 %v2862_v21, %v3641_v20 }
 0x211   :  { %v1393_v24 = vpop.f32.mrf.mxu1 }
 0x212   :  { %v3828_v26 = vmax.f32 %v3741_v37, %v1609_v54  ;;  %v1394_v49 = vadd.f32 %v3641_v20, %v1393_v24  ;;  %v1614_v53 = vmax.f32 %v1402_v46, 0.0 }
 0x213   :  { %v2863_v4 = vpop.f32.mrf.mxu1 }
 0x214   :  { %v1405_v6 = vadd.f32 %v2863_v4, %v3641_v20  ;;  %v1612_v58 = vmax.f32 %v1394_v49, 0.0  ;;  %v1694_v2 = vmax.f32 %v3748_v43, %v1614_v53 }
 0x215   :  { %v1396_v22 = vpop.f32.mrf.mxu1 }
 0x216   :  { %v1397_v16 = vadd.f32 %v3641_v20, %v1396_v22  ;;  %v1615_v56 = vmax.f32 %v1405_v6, 0.0  ;;  %v1692_v54 = vmax.f32 %v3752_v48, %v1612_v58 }
 0x217   :  { %v2866_v12 = vpop.f32.mrf.mxu1 }
 0x218   :  { %v1613_v18 = vmax.f32 %v1397_v16, 0.0  ;;  %v1418_v3 = vadd.f32 %v2866_v12, %v3641_v20  ;;  %v1695_v7 = vmax.f32 %v3758_v35, %v1615_v56 }
 0x219   :  { %v1409_v28 = vpop.f32.mrf.mxu1 }
 0x21a   :  { %v1693_v24 = vmax.f32 %v3763_v59, %v1613_v18  ;;  %v1410_v4 = vadd.f32 %v3641_v20, %v1409_v28  ;;  %v1618_v49 = vmax.f32 %v1418_v3, 0.0 }
 0x21b   :  { %v2867_v30 = vpop.f32.mrf.mxu1 }
 0x21c   :  { %v1421_v19 = vadd.f32 %v2867_v30, %v3641_v20  ;;  %v1698_v58 = vmax.f32 %v3767_v1, %v1618_v49 }
 0x21d   :  { %v1412_v33 = vpop.f32.mrf.mxu1 }
 0x21e   :  { %v1413_v22 = vadd.f32 %v3641_v20, %v1412_v33  ;;  %v1619_v35 = vmax.f32 %v1421_v19, 0.0 }
 0x21f   :  { %v2870_v31 = vpop.f32.mrf.mxu1 }
 0x220   :  { %v1617_v59 = vmax.f32 %v1413_v22, 0.0  ;;  %v1434_v18 = vadd.f32 %v2870_v31, %v3641_v20 }
 0x221   :  { %v3830_v25 = vpop.f32.mrf.mxu1 }
 0x222   :  { %v1426_v1 = vadd.f32 %v3641_v20, %v3830_v25 }
 0x223   :  { %v2871_v0 = vpop.f32.mrf.mxu1 }
 0x224   :  { %v1620_v25 = vmax.f32 %v1426_v1, 0.0 }
 0x225   :  { %v3832_v36 = vpop.f32.mrf.mxu1 }
 0x226   :  { %v1429_v31 = vadd.f32 %v3641_v20, %v3832_v36 }
 0x227   :  { %v3834_v39 = vpop.f32.mrf.mxu1 }
 0x229   :  { %v3836_v29 = vpop.f32.mrf.mxu1 }
 0x22b   :  { %v3838_v14 = vpop.f32.mrf.mxu1 }
 0x22d   :  { %v3840_v37 = vpop.f32.mrf.mxu1 }
 0x22f   :  { %v3842_v13 = vpop.f32.mrf.mxu1 }
 0x230   :  { %v1466_v1 = vadd.f32 %v3842_v13, %v3641_v20 }
 0x231   :  { %v3844_v38 = vpop.f32.mrf.mxu1 }
 0x233   :  { %v3846_v42 = vpop.f32.mrf.mxu1 }
 0x235   :  { %v3849_v23 = vpop.f32.mrf.mxu1 }
 0x236   :  { %v1461_v13 = vadd.f32 %v3641_v20, %v3849_v23 }
 0x237   :  { %v2882_v51 = vpop.f32.mrf.mxu1 }
 0x238   :  { %v1482_v52 = vadd.f32 %v2882_v51, %v3641_v20 }
 0x239   :  { %v1473_v17 = vpop.f32.mrf.mxu1 }
 0x23a   :  { %v1474_v41 = vadd.f32 %v3641_v20, %v1473_v17  ;;  %v1634_v63 = vmax.f32 %v1482_v52, 0.0  ;;  %v1616_v17 = vmax.f32 %v1410_v4, 0.0 }
 0x23b   :  { %v2883_v57 = vpop.f32.mrf.mxu1 }
 0x23c   :  { %v1485_v45 = vadd.f32 %v2883_v57, %v3641_v20  ;;  %v1632_v8 = vmax.f32 %v1474_v41, 0.0  ;;  %v1714_v46 = vmax.f32 %v1694_v2, %v1634_v63  ;;  %v1437_v57 = vadd.f32 %v2871_v0, %v3641_v20 }
 0x23d   :  { %v1476_v10 = vpop.f32.mrf.mxu1 }
 0x23e   :  { %v1635_v9 = vmax.f32 %v1485_v45, 0.0  ;;  %v1477_v21 = vadd.f32 %v3641_v20, %v1476_v10  ;;  %v1712_v51 = vmax.f32 %v1692_v54, %v1632_v8  ;;  %v1699_v45 = vmax.f32 %v3777_v11, %v1619_v35 }
 0x23f   :  { %v2886_v43 = vpop.f32.mrf.mxu1  ;;  %v1696_v10 = vmax.f32 %v3771_v5, %v1616_v17  ;;  %v1622_v54 = vmax.f32 %v1434_v18, 0.0  ;;  %v1450_v35 = vadd.f32 %v3834_v39, %v3641_v20  ;;  %v1445_v39 = vadd.f32 %v3641_v20, %v3840_v37 }
 0x240   :  { %v1715_v12 = vmax.f32 %v1695_v7, %v1635_v9  ;;  %v1633_v6 = vmax.f32 %v1477_v21, 0.0  ;;  %v1498_v30 = vadd.f32 %v2886_v43, %v3641_v20  ;;  %v1697_v7 = vmax.f32 %v3782_v60, %v1617_v59 }
 0x241   :  { %v1489_v16 = vpop.f32.mrf.mxu1  ;;  %v1702_v49 = vmax.f32 %v3786_v34, %v1622_v54  ;;  %v1700_v59 = vmax.f32 %v3790_v40, %v1620_v25  ;;  %v1442_v34 = vadd.f32 %v3641_v20, %v3836_v29 }
 0x242   :  { %v1733_v52 = vpack.c.bf16 %v1715_v12, %v1714_v46  ;;  %v1713_v53 = vmax.f32 %v1693_v24, %v1633_v6  ;;  %v1490_v48 = vadd.f32 %v3641_v20, %v1489_v16  ;;  %v1638_v41 = vmax.f32 %v1498_v30, 0.0 }
 0x243   :  { %v2887_v56 = vpop.f32.mrf.mxu1  ;;  %v1623_v24 = vmax.f32 %v1437_v57, 0.0  ;;  %v1621_v46 = vmax.f32 %v1429_v31, 0.0  ;;  %v1453_v16 = vadd.f32 %v3838_v14, %v3641_v20  ;;  %v1624_v29 = vmax.f32 %v1442_v34, 0.0 }
 0x244   :  { %v1732_v28 = vpack.c.bf16 %v1713_v53, %v1712_v51  ;;  %v1501_v33 = vadd.f32 %v2887_v56, %v3641_v20  ;;  %v1636_v2 = vmax.f32 %v1490_v48, 0.0  ;;  %v1718_v11 = vmax.f32 %v1698_v58, %v1638_v41 }
 0x245   :  { %v1492_v63 = vpop.f32.mrf.mxu1  ;;  %v1701_v56 = vmax.f32 %v3797_v47, %v1621_v46  ;;  %v1626_v58 = vmax.f32 %v1450_v35, 0.0  ;;  %v1627_v18 = vmax.f32 %v1453_v16, 0.0  ;;  %v1469_v31 = vadd.f32 %v3846_v42, %v3641_v20 }
 0x246   :  { %v1639_v3 = vmax.f32 %v1501_v33, 0.0  ;;  %v1493_v19 = vadd.f32 %v3641_v20, %v1492_v63  ;;  %2904 = vmatprep.mubr.msk.bf16.mxu0 %vm968_vm3, %v1732_v28  ;;  %v1716_v5 = vmax.f32 %v1696_v10, %v1636_v2  ;;  %v1625_v2 = vmax.f32 %v1445_v39, 0.0 }
 0x247   :  { %v2890_v0 = vpop.f32.mrf.mxu1  ;;  %2905 = vmatmul.mubr.msk.bf16.vlgmr.msra.gmra.mxu0 %vm968_vm3, %v1733_v52  ;;  %v1703_v52 = vmax.f32 %v3794_v15, %v1623_v24  ;;  %v1704_v54 = vmax.f32 %v3805_v32, %v1624_v29 }
 0x248   :  { %v1719_v8 = vmax.f32 %v1699_v45, %v1639_v3  ;;  %v1637_v9 = vmax.f32 %v1493_v19, 0.0  ;;  %v1514_v21 = vadd.f32 %v2890_v0, %v3641_v20  ;;  %v1705_v24 = vmax.f32 %v3813_v44, %v1625_v2 }
 0x249   :  { %v1505_v4 = vpop.f32.mrf.mxu1 }
 0x24a   :  { %v1735_v22 = vpack.c.bf16 %v1719_v8, %v1718_v11  ;;  %v1717_v60 = vmax.f32 %v1697_v7, %v1637_v9  ;;  %v1506_v43 = vadd.f32 %v3641_v20, %v1505_v4  ;;  %v1642_v6 = vmax.f32 %v1514_v21, 0.0 }
 0x24b   :  { %v2891_v12 = vpop.f32.mrf.mxu1  ;;  %v1706_v7 = vmax.f32 %v3801_v27, %v1626_v58  ;;  %v1707_v11 = vmax.f32 %v3809_v61, %v1627_v18  ;;  %v1458_v27 = vadd.f32 %v3641_v20, %v3844_v38 }
 0x24c   :  { %v1734_v36 = vpack.c.bf16 %v1717_v60, %v1716_v5  ;;  %v1517_v30 = vadd.f32 %v2891_v12, %v3641_v20  ;;  %v1640_v53 = vmax.f32 %v1506_v43, 0.0  ;;  %v1722_v15 = vmax.f32 %v1702_v49, %v1642_v6 }
 0x24d   :  { %v1508_v51 = vpop.f32.mrf.mxu1  ;;  %v1630_v60 = vmax.f32 %v1466_v1, 0.0  ;;  %v1631_v43 = vmax.f32 %v1469_v31, 0.0  ;;  %v1628_v38 = vmax.f32 %v1458_v27, 0.0  ;;  %v1629_v6 = vmax.f32 %v1461_v13, 0.0 }
 0x24e   :  { %v1643_v48 = vmax.f32 %v1517_v30, 0.0  ;;  %v1509_v17 = vadd.f32 %v3641_v20, %v1508_v51  ;;  %2908 = vmatprep.mubr.msk.bf16.mxu0 %vm968_vm3, %v1734_v36  ;;  %v1720_v40 = vmax.f32 %v1700_v59, %v1640_v53 }
 0x24f   :  { %v2894_v14 = vpop.f32.mrf.mxu1  ;;  %2909 = vmatmul.mubr.msk.bf16.gmra.mxu0 %vm968_vm3, %v1735_v22  ;;  %v1710_v35 = vmax.f32 %v3817_v50, %v1630_v60  ;;  %v1711_v51 = vmax.f32 %v3825_v62, %v1631_v43  ;;  %v1709_v59 = vmax.f32 %v3828_v26, %v1629_v6 }
 0x250   :  { %v1723_v28 = vmax.f32 %v1703_v52, %v1643_v48  ;;  %v1641_v41 = vmax.f32 %v1509_v17, 0.0  ;;  %v1530_v33 = vadd.f32 %v2894_v14, %v3641_v20  ;;  %v1708_v17 = vmax.f32 %v3821_v55, %v1628_v38  ;;  %v3933_v55 = vld [vmem:[%s4021_s6] ss:$0 sm:$0xff] }
 0x251   :  { %v1521_v57 = vpop.f32.mrf.mxu1 }
 0x252   :  { %v1737_v63 = vpack.c.bf16 %v1723_v28, %v1722_v15  ;;  %v1721_v47 = vmax.f32 %v1701_v56, %v1641_v41  ;;  %v1522_v45 = vadd.f32 %v3641_v20, %v1521_v57  ;;  %v1646_v19 = vmax.f32 %v1530_v33, 0.0 }
 0x253   :  { %v2895_v3 = vpop.f32.mrf.mxu1 }
 0x254   :  { %v1736_v37 = vpack.c.bf16 %v1721_v47, %v1720_v40  ;;  %v1533_v10 = vadd.f32 %v2895_v3, %v3641_v20  ;;  %v1644_v8 = vmax.f32 %v1522_v45, 0.0  ;;  %v1726_v61 = vmax.f32 %v1706_v7, %v1646_v19 }
 0x255   :  { %v1524_v0 = vpop.f32.mrf.mxu1 }
 0x256   :  { %v1647_v9 = vmax.f32 %v1533_v10, 0.0  ;;  %v1525_v21 = vadd.f32 %v3641_v20, %v1524_v0  ;;  %2912 = vmatprep.mubr.msk.bf16.mxu0 %vm968_vm3, %v1736_v37  ;;  %v1724_v32 = vmax.f32 %v1704_v54, %v1644_v8 }
 0x257   :  { %v2898_v42 = vpop.f32.mrf.mxu1  ;;  %2913 = vmatmul.mubr.msk.bf16.gmra.mxu0 %vm968_vm3, %v1737_v63 }
 0x258   :  { %v1727_v4 = vmax.f32 %v1707_v11, %v1647_v9  ;;  %v1645_v5 = vmax.f32 %v1525_v21, 0.0  ;;  %v1546_v22 = vadd.f32 %v2898_v42, %v3641_v20 }
 0x259   :  { %v1537_v25 = vpop.f32.mrf.mxu1 }
 0x25a   :  { %v1739_v46 = vpack.c.bf16 %v1727_v4, %v1726_v61  ;;  %v1725_v44 = vmax.f32 %v1705_v24, %v1645_v5  ;;  %v1538_v12 = vadd.f32 %v3641_v20, %v1537_v25  ;;  %v1650_v30 = vmax.f32 %v1546_v22, 0.0 }
 0x25b   :  { %v2899_v36 = vpop.f32.mrf.mxu1 }
 0x25c   :  { %v1738_v23 = vpack.c.bf16 %v1725_v44, %v1724_v32  ;;  %v1549_v49 = vadd.f32 %v2899_v36, %v3641_v20  ;;  %v1648_v52 = vmax.f32 %v1538_v12, 0.0  ;;  %v1730_v56 = vmax.f32 %v1710_v35, %v1650_v30 }
 0x25d   :  { %v1540_v16 = vpop.f32.mrf.mxu1 }
 0x25e   :  { %v1651_v53 = vmax.f32 %v1549_v49, 0.0  ;;  %v1541_v48 = vadd.f32 %v3641_v20, %v1540_v16  ;;  %2916 = vmatprep.mubr.msk.bf16.mxu0 %vm968_vm3, %v1738_v23  ;;  %v1728_v14 = vmax.f32 %v1708_v17, %v1648_v52 }
 0x25f   :  { %2917 = vmatmul.mubr.msk.bf16.gmra.mxu0 %vm968_vm3, %v1739_v46 }
 0x260   :  { %v1731_v34 = vmax.f32 %v1711_v51, %v1651_v53  ;;  %v1649_v39 = vmax.f32 %v1541_v48, 0.0 }
 0x262   :  { %v1741_v50 = vpack.c.bf16 %v1731_v34, %v1730_v56  ;;  %v1729_v15 = vmax.f32 %v1709_v59, %v1649_v39 }
 0x264   :  { %v1740_v28 = vpack.c.bf16 %v1729_v15, %v1728_v14 }
 0x266   :  { %2920 = vmatprep.mubr.msk.bf16.mxu0 %vm968_vm3, %v1740_v28 }
 0x267   :  { %2921 = vmatmul.mubr.msk.bf16.gmra.mxu0 %vm968_vm3, %v1741_v50 }
 0x307   :  { %v2906_v20 = vpop.f32.mrf.mxu0 }
 0x308   :  { %v1838_v58 = vadd.f32 %v2906_v20, %v3933_v55 }
 0x309   :  { %v1829_v62 = vpop.f32.mrf.mxu0 }
 0x30a   :  { %v1830_v26 = vadd.f32 %v3933_v55, %v1829_v62  ;;  %v1910_v29 = vmax.f32 %v1838_v58, 0.0 }
 0x30b   :  { %v2907_v41 = vpop.f32.mrf.mxu0 }
 0x30c   :  { %v1841_v33 = vadd.f32 %v2907_v41, %v3933_v55  ;;  %v1908_v47 = vmax.f32 %v1830_v26, 0.0 }
 0x30d   :  { %v1832_v18 = vpop.f32.mrf.mxu0 }
 0x30e   :  { %v1833_v57 = vadd.f32 %v3933_v55, %v1832_v18  ;;  %v1911_v40 = vmax.f32 %v1841_v33, 0.0 }
 0x30f   :  { %v2910_v63 = vpop.f32.mrf.mxu0 }
 0x310   :  { %v1909_v45 = vmax.f32 %v1833_v57, 0.0  ;;  %v1929_v37 = vpack.c.bf16 %v1911_v40, %v1910_v29  ;;  %v1854_v1 = vadd.f32 %v2910_v63, %v3933_v55  ;;  %v2994_v57 = vld [vmem:[%s4024_s9 + $0x18] sm:$0xff]   ;;  %v2996_v40 = vld [vmem:[%s4024_s9 + $0x8] sm:$0xff]   ;;  %v2997_v63 = vld [vmem:[%s4024_s9] sm:$0xff]  }
 0x311   :  { %v1845_v2 = vpop.f32.mrf.mxu0  ;;  %2952 = vmatprep.subr.bf16.mxu0 %v2994_v57  ;;  %v3000_v29 = vld [vmem:[%s4026_s11 + $0x28] sm:$0xff]  }
 0x312   :  { %v1928_v3 = vpack.c.bf16 %v1909_v45, %v1908_v47  ;;  %v1846_v10 = vadd.f32 %v3933_v55, %v1845_v2  ;;  %v1914_v54 = vmax.f32 %v1854_v1, 0.0  ;;  %2953 = vmatpush3.bf16.msra.mxu0 %v2994_v57  ;;  %v2998_v47 = vld [vmem:[%s4026_s11 + $0x38] sm:$0xff]   ;;  %v2999_v45 = vld [vmem:[%s4026_s11 + $0x30] sm:$0xff]   ;;  %v3001_v2 = vld [vmem:[%s4026_s11 + $0x20] sm:$0xff]  }
 0x313   :  { %v2911_v19 = vpop.f32.mrf.mxu0  ;;  %2964 = vmatprep.subr.bf16.mxu1 %v2998_v47 }
 0x314   :  { %v1857_v7 = vadd.f32 %v2911_v19, %v3933_v55  ;;  %2932 = vmatprep.mubr.msk.bf16.mxu1 %vm1977_vm4, %v1928_v3  ;;  %v1912_v9 = vmax.f32 %v1846_v10, 0.0  ;;  %v3002_v3 = vld [vmem:[%s4026_s11 + $0x18] sm:$0xff]  }
 0x315   :  { %v1848_v31 = vpop.f32.mrf.mxu0  ;;  %2933 = vmatmul.mubr.msk.bf16.vlgmr.msra.gmra.mxu1 %vm1977_vm4, %v1929_v37  ;;  %v3003_v37 = vld [vmem:[%s4026_s11 + $0x10] sm:$0xff]  }
 0x316   :  { %v1849_v0 = vadd.f32 %v3933_v55, %v1848_v31  ;;  %v1915_v11 = vmax.f32 %v1857_v7, 0.0  ;;  %2965 = vmatpush3.bf16.msra.mxu1 %v2998_v47 }
 0x317   :  { %v2914_v8 = vpop.f32.mrf.mxu0  ;;  %2966 = vmatprep.subr.bf16.mxu1 %v2999_v45 }
 0x318   :  { %v1913_v21 = vmax.f32 %v1849_v0, 0.0  ;;  %v1931_v13 = vpack.c.bf16 %v1915_v11, %v1914_v54  ;;  %v1870_v5 = vadd.f32 %v2914_v8, %v3933_v55 }
 0x319   :  { %v1861_v24 = vpop.f32.mrf.mxu0 }
 0x31a   :  { %v1930_v27 = vpack.c.bf16 %v1913_v21, %v1912_v9  ;;  %v1862_v61 = vadd.f32 %v3933_v55, %v1861_v24  ;;  %v1918_v44 = vmax.f32 %v1870_v5, 0.0  ;;  %2967 = vmatpush3.bf16.msra.mxu1 %v2999_v45 }
 0x31b   :  { %v2915_v42 = vpop.f32.mrf.mxu0  ;;  %2968 = vmatprep.subr.bf16.mxu1 %v3000_v29 }
 0x31c   :  { %v1873_v4 = vadd.f32 %v2915_v42, %v3933_v55  ;;  %2936 = vmatprep.mubr.msk.bf16.mxu1 %vm1977_vm4, %v1930_v27  ;;  %v1916_v32 = vmax.f32 %v1862_v61, 0.0  ;;  %v2518_v27 = vld [vmem:[%s4023_s8] ss:$0 sm:$0xff] }
 0x31d   :  { %v1864_v22 = vpop.f32.mrf.mxu0  ;;  %2937 = vmatmul.mubr.msk.bf16.gmra.mxu1 %vm1977_vm4, %v1931_v13 }
 0x31e   :  { %v1865_v60 = vadd.f32 %v3933_v55, %v1864_v22  ;;  %v1919_v43 = vmax.f32 %v1873_v4, 0.0  ;;  %2969 = vmatpush3.bf16.msra.mxu1 %v3000_v29 }
 0x31f   :  { %v2918_v25 = vpop.f32.mrf.mxu0  ;;  %2970 = vmatprep.subr.bf16.mxu1 %v3001_v2 }
 0x320   :  { %v1917_v46 = vmax.f32 %v1865_v60, 0.0  ;;  %v1933_v36 = vpack.c.bf16 %v1919_v43, %v1918_v44  ;;  %v1886_v49 = vadd.f32 %v2918_v25, %v3933_v55 }
 0x321   :  { %v1877_v12 = vpop.f32.mrf.mxu0 }
 0x322   :  { %v1932_v38 = vpack.c.bf16 %v1917_v46, %v1916_v32  ;;  %v1878_v23 = vadd.f32 %v3933_v55, %v1877_v12  ;;  %v1922_v17 = vmax.f32 %v1886_v49, 0.0  ;;  %2971 = vmatpush3.bf16.msra.mxu1 %v3001_v2 }
 0x323   :  { %v2919_v6 = vpop.f32.mrf.mxu0  ;;  %2972 = vmatprep.subr.bf16.mxu1 %v3002_v3 }
 0x324   :  { %v1889_v30 = vadd.f32 %v2919_v6, %v3933_v55  ;;  %2940 = vmatprep.mubr.msk.bf16.mxu1 %vm1977_vm4, %v1932_v38  ;;  %v1920_v53 = vmax.f32 %v1878_v23, 0.0 }
 0x325   :  { %v1880_v35 = vpop.f32.mrf.mxu0  ;;  %2941 = vmatmul.mubr.msk.bf16.gmra.mxu1 %vm1977_vm4, %v1933_v36 }
 0x326   :  { %v1881_v16 = vadd.f32 %v3933_v55, %v1880_v35  ;;  %v1923_v51 = vmax.f32 %v1889_v30, 0.0  ;;  %2973 = vmatpush3.bf16.msra.mxu1 %v3002_v3 }
 0x327   :  { %v2922_v52 = vpop.f32.mrf.mxu0  ;;  %2974 = vmatprep.subr.bf16.mxu1 %v3003_v37 }
 0x328   :  { %v1921_v48 = vmax.f32 %v1881_v16, 0.0  ;;  %v1935_v34 = vpack.c.bf16 %v1923_v51, %v1922_v17  ;;  %v1902_v15 = vadd.f32 %v2922_v52, %v3933_v55 }
 0x329   :  { %v1893_v59 = vpop.f32.mrf.mxu0 }
 0x32a   :  { %v1934_v56 = vpack.c.bf16 %v1921_v48, %v1920_v53  ;;  %v1894_v14 = vadd.f32 %v3933_v55, %v1893_v59  ;;  %v1926_v33 = vmax.f32 %v1902_v15, 0.0  ;;  %2975 = vmatpush3.bf16.msra.mxu1 %v3003_v37 }
 0x32b   :  { %v2923_v39 = vpop.f32.mrf.mxu0 }
 0x32c   :  { %v1905_v50 = vadd.f32 %v2923_v39, %v3933_v55  ;;  %2944 = vmatprep.mubr.msk.bf16.mxu1 %vm1977_vm4, %v1934_v56  ;;  %v1924_v41 = vmax.f32 %v1894_v14, 0.0 }
 0x32d   :  { %v1896_v28 = vpop.f32.mrf.mxu0  ;;  %2945 = vmatmul.mubr.msk.bf16.gmra.mxu1 %vm1977_vm4, %v1935_v34 }
 0x32e   :  { %v1897_v20 = vadd.f32 %v3933_v55, %v1896_v28  ;;  %v1927_v62 = vmax.f32 %v1905_v50, 0.0  ;;  %v2995_v55 = vld [vmem:[%s4024_s9 + $0x10] sm:$0xff]  }
 0x32f   :  { %2954 = vmatprep.subr.bf16.mxu0 %v2995_v55 }
 0x330   :  { %v1925_v26 = vmax.f32 %v1897_v20, 0.0  ;;  %v1937_v18 = vpack.c.bf16 %v1927_v62, %v1926_v33  ;;  %2955 = vmatpush3.bf16.msra.mxu0 %v2995_v55 }
 0x331   :  { %2956 = vmatprep.subr.bf16.mxu0 %v2996_v40 }
 0x332   :  { %v1936_v58 = vpack.c.bf16 %v1925_v26, %v1924_v41 }
 0x334   :  { %2948 = vmatprep.mubr.msk.bf16.mxu1 %vm1977_vm4, %v1936_v58  ;;  %2957 = vmatpush3.bf16.msra.mxu0 %v2996_v40 }
 0x335   :  { %2949 = vmatmul.mubr.msk.bf16.gmra.mxu1 %vm1977_vm4, %v1937_v18  ;;  %2958 = vmatprep.subr.bf16.mxu0 %v2997_v63 }
 0x338   :  { %2959 = vmatpush3.bf16.msra.mxu0 %v2997_v63 }
 0x3d5   :  { %v2934_v19 = vpop.f32.mrf.mxu1 }
 0x3d6   :  { %v2051_v61 = vadd.f32 %v2934_v19, %v2518_v27 }
 0x3d7   :  { %v2042_v10 = vpop.f32.mrf.mxu1 }
 0x3d8   :  { %v2043_v5 = vadd.f32 %v2518_v27, %v2042_v10  ;;  %v2123_v38 = vmax.f32 %v2051_v61, 0.0 }
 0x3d9   :  { %v2935_v7 = vpop.f32.mrf.mxu1 }
 0x3da   :  { %v2054_v43 = vadd.f32 %v2935_v7, %v2518_v27  ;;  %v2121_v30 = vmax.f32 %v2043_v5, 0.0 }
 0x3db   :  { %v2045_v1 = vpop.f32.mrf.mxu1 }
 0x3dc   :  { %v2046_v36 = vadd.f32 %v2518_v27, %v2045_v1  ;;  %v2124_v52 = vmax.f32 %v2054_v43, 0.0 }
 0x3dd   :  { %v2938_v31 = vpop.f32.mrf.mxu1 }
 0x3de   :  { %v2067_v32 = vadd.f32 %v2938_v31, %v2518_v27  ;;  %v2122_v50 = vmax.f32 %v2046_v36, 0.0 }
 0x3df   :  { %v2058_v0 = vpop.f32.mrf.mxu1 }
 0x3e0   :  { %v2059_v4 = vadd.f32 %v2518_v27, %v2058_v0  ;;  %v2127_v59 = vmax.f32 %v2067_v32, 0.0 }
 0x3e1   :  { %v2939_v11 = vpop.f32.mrf.mxu1 }
 0x3e2   :  { %v2070_v22 = vadd.f32 %v2939_v11, %v2518_v27  ;;  %v2125_v6 = vmax.f32 %v2059_v4, 0.0  ;;  %v2143_v63 = vmax.f32 %v2123_v38, %v2127_v59  ;;  %v3005_v4 = vld [vmem:[%s4026_s11] sm:$0xff]  }
 0x3e3   :  { %v2061_v8 = vpop.f32.mrf.mxu1 }
 0x3e4   :  { %v2062_v25 = vadd.f32 %v2518_v27, %v2061_v8  ;;  %v2128_v49 = vmax.f32 %v2070_v22, 0.0  ;;  %v2141_v15 = vmax.f32 %v2121_v30, %v2125_v6 }
 0x3e5   :  { %v2942_v9 = vpop.f32.mrf.mxu1 }
 0x3e6   :  { %v2083_v35 = vadd.f32 %v2942_v9, %v2518_v27  ;;  %v2126_v53 = vmax.f32 %v2062_v25, 0.0  ;;  %v2144_v62 = vmax.f32 %v2124_v52, %v2128_v49 }
 0x3e7   :  { %v2074_v21 = vpop.f32.mrf.mxu1 }
 0x3e8   :  { %v2075_v46 = vadd.f32 %v2518_v27, %v2074_v21  ;;  %v2131_v41 = vmax.f32 %v2083_v35, 0.0  ;;  %v2142_v18 = vmax.f32 %v2122_v50, %v2126_v53 }
 0x3e9   :  { %v2943_v54 = vpop.f32.mrf.mxu1 }
 0x3ea   :  { %v2086_v44 = vadd.f32 %v2943_v54, %v2518_v27  ;;  %v2129_v56 = vmax.f32 %v2075_v46, 0.0  ;;  %v2147_v7 = vmax.f32 %v2143_v63, %v2131_v41 }
 0x3eb   :  { %v2077_v24 = vpop.f32.mrf.mxu1 }
 0x3ec   :  { %v2078_v23 = vadd.f32 %v2518_v27, %v2077_v24  ;;  %v2132_v34 = vmax.f32 %v2086_v44, 0.0  ;;  %v2145_v47 = vmax.f32 %v2141_v15, %v2129_v56 }
 0x3ed   :  { %v2946_v13 = vpop.f32.mrf.mxu1 }
 0x3ee   :  { %v2099_v39 = vadd.f32 %v2946_v13, %v2518_v27  ;;  %v2130_v28 = vmax.f32 %v2078_v23, 0.0  ;;  %v2148_v45 = vmax.f32 %v2144_v62, %v2132_v34 }
 0x3ef   :  { %v2090_v42 = vpop.f32.mrf.mxu1 }
 0x3f0   :  { %v2091_v48 = vadd.f32 %v2518_v27, %v2090_v42  ;;  %v2135_v29 = vmax.f32 %v2099_v39, 0.0  ;;  %v2146_v3 = vmax.f32 %v2142_v18, %v2130_v28 }
 0x3f1   :  { %v2947_v60 = vpop.f32.mrf.mxu1 }
 0x3f2   :  { %v2102_v16 = vadd.f32 %v2947_v60, %v2518_v27  ;;  %v2133_v57 = vmax.f32 %v2091_v48, 0.0  ;;  %v2151_v9 = vmax.f32 %v2147_v7, %v2135_v29  ;;  %v2533_v60 = vld [vmem:[%s4025_s10] ss:$0 sm:$0xff]  ;;  %s3029_s10 = smov [#allocation2]  }
 0x3f3   :  { %v2093_v12 = vpop.f32.mrf.mxu1  ;;  %s2393_s22 = sshll.u32 %s3029_s10, 4  ;;  %s2394_s22 = int_to_ptr.vmem [resolvable:$true] %s2393_s22 }
 0x3f4   :  { %v2094_v17 = vadd.f32 %v2518_v27, %v2093_v12  ;;  %v2136_v26 = vmax.f32 %v2102_v16, 0.0  ;;  %v2149_v0 = vmax.f32 %v2145_v47, %v2133_v57  ;;  %s3006_s23 = scalar_lea.vmem %s2394_s22, 128  ;;  %p3011_p1 = scmp.lt.s32.totalorder %s2394_s22, %s2394_s22 }
 0x3f5   :  { %v2950_v51 = vpop.f32.mrf.mxu1  ;;  %p3007_p0 = scmp.ne.s32.totalorder %s2394_s22, %s3006_s23  ;;  %p3012_p2 = scmp.lt.s32.totalorder %s3006_s23, %s3006_s23 }
 0x3f6   :  { %v2115_v33 = vadd.f32 %v2950_v51, %v2518_v27  ;;  %v2134_v55 = vmax.f32 %v2094_v17, 0.0  ;;  %v2152_v1 = vmax.f32 %v2148_v45, %v2136_v26  ;;  %v2540_v51 = vld [vmem:[%s4027_s12] ss:$0 sm:$0xff] }
 0x3f7   :  { %v2106_v14 = vpop.f32.mrf.mxu1  ;;  %p3013_p3 = por %p3012_p2, %p3011_p1 }
 0x3f8   :  { %v2107_v20 = vadd.f32 %v2518_v27, %v2106_v14  ;;  %v2139_v31 = vmax.f32 %v2115_v33, 0.0  ;;  %v2150_v11 = vmax.f32 %v2146_v3, %v2134_v55 }
 0x3f9   :  { %v2951_v58 = vpop.f32.mrf.mxu1  ;;  %p3014_p4 = pnand %p3013_p3, %p3007_p0 }
 0x3fa   :  { %v2118_v40 = vadd.f32 %v2951_v58, %v2518_v27  ;;  %v2137_v37 = vmax.f32 %v2107_v20, 0.0  ;;  %v2155_v13 = vmax.f32 %v2151_v9, %v2139_v31 }
 0x3fb   :  { %v2109_v2 = vpop.f32.mrf.mxu1 }
 0x3fc   :  { %v2140_v19 = vmax.f32 %v2118_v40, 0.0  ;;  %v2110_v10 = vadd.f32 %v2518_v27, %v2109_v2  ;;  %v2153_v54 = vmax.f32 %v2149_v0, %v2137_v37  ;;  %v3004_v27 = vld [vmem:[%s4026_s11 + $0x8] sm:$0xff]  }
 0x3fd   :  { %2976 = vmatprep.subr.bf16.mxu1 %v3004_v27 }
 0x3fe   :  { %v2138_v8 = vmax.f32 %v2110_v10, 0.0  ;;  %v2156_v21 = vmax.f32 %v2152_v1, %v2140_v19  ;;  %2977 = vmatpush3.bf16.msra.mxu1 %v3004_v27 }
 0x3ff   :  { %2978 = vmatprep.subr.bf16.mxu1 %v3005_v4 }
 0x400   :  { %v2154_v24 = vmax.f32 %v2150_v11, %v2138_v8  ;;  %v2158_v61 = vpack.c.bf16 %v2156_v21, %v2155_v13 }
 0x402   :  { %v2157_v42 = vpack.c.bf16 %v2154_v24, %v2153_v54  ;;  %2979 = vmatpush3.bf16.msra.mxu1 %v3005_v4 }
 0x404   :  { %2960 = vmatprep.mubr.msk.bf16.mxu0 %vm1977_vm4, %v2157_v42 }
 0x405   :  { %2961 = vmatmul.mubr.msk.bf16.vlgmr.msra.gmra.mxu0 %vm1977_vm4, %v2158_v61 }
 0x4c5   :  { %v2962_v5 = vpop.f32.mrf.mxu0 }
 0x4c6   :  { %v2247_v46 = vadd.f32 %v2962_v5, %v2533_v60 }
 0x4c7   :  { %v2238_v22 = vpop.f32.mrf.mxu0 }
 0x4c8   :  { %v2239_v25 = vadd.f32 %v2533_v60, %v2238_v22  ;;  %v2255_v23 = vmax.f32 %v2247_v46, 0.0 }
 0x4c9   :  { %v2963_v43 = vpop.f32.mrf.mxu0 }
 0x4ca   :  { %v2250_v32 = vadd.f32 %v2963_v43, %v2533_v60  ;;  %v2253_v36 = vmax.f32 %v2239_v25, 0.0 }
 0x4cb   :  { %v2241_v44 = vpop.f32.mrf.mxu0 }
 0x4cc   :  { %v2242_v12 = vadd.f32 %v2533_v60, %v2241_v44  ;;  %v2256_v38 = vmax.f32 %v2250_v32, 0.0 }
 0x4ce   :  { %v2254_v6 = vmax.f32 %v2242_v12, 0.0  ;;  %v2258_v49 = vpack.c.bf16 %v2256_v38, %v2255_v23 }
 0x4d0   :  { %v2257_v30 = vpack.c.bf16 %v2254_v6, %v2253_v36 }
 0x4d2   :  { %2980 = vmatprep.mubr.bf16.mxu1 %v2257_v30 }
 0x4d3   :  { %2981 = vmatmul.mubr.bf16.vlgmr.msra.gmra.mxu1 %v2258_v49 }
 0x593   :  { %v2982_v35 = vpop.f32.mrf.mxu1 }
 0x594   :  { %v2373_v17 = vadd.f32 %v2982_v35, %v2540_v51 }
 0x595   :  { %v2364_v16 = vpop.f32.mrf.mxu1 }
 0x596   :  { %v2365_v53 = vadd.f32 %v2540_v51, %v2364_v16  ;;  %v2381_v14 = vmax.f32 %v2373_v17, 0.0 }
 0x597   :  { %v2983_v52 = vpop.f32.mrf.mxu1 }
 0x598   :  { %v2379_v56 = vmax.f32 %v2365_v53, 0.0  ;;  %v2376_v34 = vadd.f32 %v2983_v52, %v2540_v51 }
 0x599   :  { %v2367_v48 = vpop.f32.mrf.mxu1 }
 0x59a   :  { %v2368_v59 = vadd.f32 %v2540_v51, %v2367_v48  ;;  %v2382_v15 = vmax.f32 %v2376_v34, 0.0 }
 0x59c   :  { %v2380_v39 = vmax.f32 %v2368_v59, 0.0 }
 0x59e   :  { %v2383_v50 = vmax.f32 %v2379_v56, %v2380_v39 }
 0x5a0   :  { %v2384_v28 = vmax.f32 %v2383_v50, %v2381_v14 }
 0x5a2   :  { %v2385_v20 = vmax.f32 %v2384_v28, %v2382_v15 }
 0x5a4   :  { %2386 = vst [vmem:[#allocation2] sm:$0xff] %v2385_v20 }
 0x5a5   :  { %3017 = shalt.err (!%p3014_p4)
}
 0x5a6   :  { %2396 = dma.vmem_to_hbm [thread:$0]  %s2394_s22, 128, %s4028_s13, [#allocation3]  }
 0x5a7   :  { %3026 = dma.done.wait [#allocation3], 128  }
 0x5a8   :  { %3027 = vsyncadd [#allocation3], 4294967168 }
 0x5a9   :  { %2400 = vsyncpa [#allocation3], 1 }

</bundles_post_ra>
